<compile_context>
chip_gen: v5e
topology: v5e:2x2
jax: 0.10.0
libtpu: 0.0.40
codegen_flags: <defaults>
</compile_context>

<pallas_src>
import math
from functools import partial

import numpy as np
import jax
import jax.numpy as jnp
from jax.experimental import pallas as pl
from jax.experimental.pallas import tpu as pltpu


_MAX_TILE_ROWS = 1024                 # hard cap on rows per tile (multiple of 8)
_TILE_BYTES_BUDGET = 4 * 1024 * 1024  # ~4 MiB per output block (double-buffered)


# ---------------------------------------------------------------------------
# helpers (plain JAX glue, mirror the torch helpers exactly)
# ---------------------------------------------------------------------------
def make_tuple(x):
    if isinstance(x, (tuple, list)):
        return tuple(x)
    assert isinstance(x, int)
    return (x,)


def create_ndgrid(resolution, normalized_coords=True, dtype=jnp.float32):
    """n-D grid, coords in [-1,1) if normalized else integer indices.
    Matches torch.meshgrid(..., indexing='xy') + '(z y x)'/'(y x)' flatten."""
    assert len(resolution) <= 3, "Only upto 3D grids are supported"
    axes = []
    for res in resolution:
        if normalized_coords:
            axes.append(jnp.linspace(-1.0, 1.0, res + 1, dtype=dtype)[:-1])
        else:
            axes.append(jnp.arange(0, res, dtype=dtype))
    grids = jnp.meshgrid(*axes, indexing="xy")
    grid = jnp.stack(grids, axis=-1)
    return grid.reshape(-1, len(resolution))


def _round_up(x, m):
    return ((x + m - 1) // m) * m


def _tiling(P, embed_dim, out_itemsize):
    """Pick (tile_p, p_pad): tile_p multiple of 8, block <= budget, minimal pad."""
    P = max(int(P), 1)
    row_bytes = max(int(embed_dim) * int(out_itemsize), 1)
    max_rows = (_TILE_BYTES_BUDGET // row_bytes) // 8 * 8
    max_rows = max(8, min(max_rows, _MAX_TILE_ROWS))
    num_tiles = -(-P // max_rows)                     # cdiv
    tile_p = _round_up(-(-P // num_tiles), 8)         # cdiv then round to 8
    p_pad = num_tiles * tile_p
    return tile_p, p_pad


# ---------------------------------------------------------------------------
# Pallas kernels
# ---------------------------------------------------------------------------
def _sinusoid_pos_kernel(pos_ref, table_ref, out_ref, *, ndim):
    # pos_ref  : (TILE_P, ndim)            f32 positions
    # table_ref: (1+ndim, embed_dim)       f32 row 0 = phase (0 / pi/2),
    #                                          row 1+d = lane-masked freq of dim d
    # out_ref  : (TILE_P, embed_dim)
    table = table_ref[...]
    pos = pos_ref[...]
    acc = table[0:1, :]                                    # phase row
    for d in range(ndim):                                  # static, <= 3
        acc = acc + pos[:, d:d + 1] * table[1 + d:2 + d, :]
    out_ref[...] = jnp.sin(acc).astype(out_ref.dtype)      # one lane-dense store


def _sinusoid_grid_kernel(table_ref, out_ref, *, dim_params, tile_p):
    # Positions are generated in-kernel from the flat row index; no position DMA.
    # dim_params[d] = (div, mod, scale, offset): idx_d = (m // div) % mod,
    #                 pos_d = idx_d * scale + offset.
    table = table_ref[...]
    rows = jax.lax.broadcasted_iota(jnp.int32, (tile_p, 1), 0).astype(jnp.float32)
    m = rows + (pl.program_id(0) * tile_p).astype(jnp.float32)
    acc = table[0:1, :]
    for d, (div, mod, scale, offset) in enumerate(dim_params):
        # exact float floor-div/mod for m < 2^21 (the +0.5 bias keeps the true
        # quotient away from integer boundaries so floor is exact).
        if div == 1:
            q = m
        else:
            q = jnp.floor((m + 0.5) * np.float32(1.0 / div))
        idx = q - np.float32(mod) * jnp.floor((q + 0.5) * np.float32(1.0 / mod))
        col = idx * np.float32(scale) + np.float32(offset)
        acc = acc + col * table[1 + d:2 + d, :]
    out_ref[...] = jnp.sin(acc).astype(out_ref.dtype)


# ---------------------------------------------------------------------------
# pallas_call wrappers
# ---------------------------------------------------------------------------
def _encode_from_positions(pos, table, embed_dim, out_dtype):
    P, ndim = pos.shape
    out_itemsize = jnp.dtype(out_dtype).itemsize
    tile_p, p_pad = _tiling(P, embed_dim, out_itemsize)
    if p_pad != P:
        pos = jnp.pad(pos, ((0, p_pad - P), (0, 0)))
    n_rows = 1 + ndim
    out = pl.pallas_call(
        partial(_sinusoid_pos_kernel, ndim=ndim),
        out_shape=jax.ShapeDtypeStruct((p_pad, embed_dim), out_dtype),
        grid=(p_pad // tile_p,),
        in_specs=[
            pl.BlockSpec((tile_p, ndim), lambda i: (i, 0)),
            pl.BlockSpec((n_rows, embed_dim), lambda i: (0, 0)),
        ],
        out_specs=pl.BlockSpec((tile_p, embed_dim), lambda i: (i, 0)),
        compiler_params=pltpu.CompilerParams(dimension_semantics=("parallel",)),
        cost_estimate=pl.CostEstimate(
            flops=int(2 * (ndim + 1) * p_pad * embed_dim),
            transcendentals=int(p_pad * embed_dim),
            bytes_accessed=int(4 * (p_pad * ndim + n_rows * embed_dim)
                               + out_itemsize * p_pad * embed_dim),
        ),
    )(pos, table)
    return out[:P] if p_pad != P else out


def _encode_patch_grid(table, dim_params, num_patches, embed_dim, out_dtype):
    P = num_patches
    out_itemsize = jnp.dtype(out_dtype).itemsize
    tile_p, p_pad = _tiling(P, embed_dim, out_itemsize)
    ndim = len(dim_params)
    n_rows = 1 + ndim
    out = pl.pallas_call(
        partial(_sinusoid_grid_kernel, dim_params=dim_params, tile_p=tile_p),
        out_shape=jax.ShapeDtypeStruct((p_pad, embed_dim), out_dtype),
        grid=(p_pad // tile_p,),
        in_specs=[pl.BlockSpec((n_rows, embed_dim), lambda i: (0, 0))],
        out_specs=pl.BlockSpec((tile_p, embed_dim), lambda i: (i, 0)),
        compiler_params=pltpu.CompilerParams(dimension_semantics=("parallel",)),
        cost_estimate=pl.CostEstimate(
            flops=int((2 * ndim + 6) * p_pad * embed_dim),
            transcendentals=int(p_pad * embed_dim),
            bytes_accessed=int(4 * n_rows * embed_dim
                               + out_itemsize * p_pad * embed_dim),
        ),
    )(table)
    return out[:P] if p_pad != P else out


# ---------------------------------------------------------------------------
# Module wrapper
# ---------------------------------------------------------------------------
class SinusoidalEmbed:
    def __init__(self, size, stride, embed_dim=768, logspace=False,
                 out_dtype=jnp.float32):
        size = make_tuple(size)
        stride = make_tuple(stride)
        assert len(size) < 4, "only 1D/2D/3D grids supported"
        assert len(size) == len(stride)
        self.patches_resolution = [s // stride[i] for i, s in enumerate(size)]
        self.embed_dim = embed_dim
        self.num_patches = int(np.prod(self.patches_resolution))
        assert embed_dim % 2 == 0
        self.num_bands = math.ceil(embed_dim / (2 * len(size)))
        # f32 by default (matches torch); bf16 halves HBM writeback.
        self.out_dtype = out_dtype

        resolution = 10000
        ndim = len(size)
        if logspace:
            fb = jnp.stack(
                [jnp.logspace(0.0, -math.log2(resolution / 2.0),
                              self.num_bands + 1, base=2.0)[:-1]
                 for _ in range(ndim)], axis=0)
        else:
            fb = jnp.stack(
                [jnp.linspace(0.0, 1.0, self.num_bands + 1)[:-1]
                 for _ in range(ndim)], axis=0)
            fb = resolution ** (-fb)
        self.frequency_bands = fb.astype(jnp.float32)          # (ndim, num_bands)
        self.table = jnp.asarray(
            self._build_table(np.asarray(self.frequency_bands)))  # (1+ndim, embed_dim)
        self._cache = {}   # mirrors torch's cached_encoding (keyed by coord mode)

    # ---- host-side packing of freq/phase rows matching the output lane layout ----
    def _build_table(self, fb):
        ndim, B = fb.shape
        F = ndim * 2 * B
        table = np.zeros((1 + ndim, F), np.float32)
        for d in range(ndim):
            lo = 2 * B * d
            table[0, lo + B: lo + 2 * B] = np.float32(np.pi / 2)   # cos = sin(x+pi/2)
            table[1 + d, lo: lo + B] = fb[d]                       # sin bands
            table[1 + d, lo + B: lo + 2 * B] = fb[d]               # cos bands
        return table[:, : self.embed_dim]   # trimmed: kernel writes embed_dim lanes

    def _dim_params(self, normalized_coords):
        res = self.patches_resolution
        ndim = len(res)
        if ndim == 1:
            divs = [1]
        elif ndim == 2:
            divs = [1, res[0]]
        else:  # 3D: grid shape (r1, r0, r2); m = i*r0*r2 + j*r2 + k; pos=(a0[j],a1[i],a2[k])
            divs = [res[2], res[0] * res[2], 1]
        params = []
        for d in range(ndim):
            r = res[d]
            if normalized_coords:
                scale, offset = 2.0 / r, -1.0
            else:
                scale, offset = 1.0, 0.0
            params.append((int(divs[d]), int(r), float(scale), float(offset)))
        return tuple(params)

    # ---- torch forward_with_x: arbitrary positions -> embeddings ----
    def forward_with_x(self, x):
        x = jnp.asarray(x, jnp.float32)
        if x.ndim < 2:
            x = x[..., None]
        lead = x.shape[:-1]
        ndim = x.shape[-1]
        assert ndim == len(self.patches_resolution), \
            "last dim of x must match the module's grid dimensionality"
        x2 = x.reshape(-1, ndim)
        out = _encode_from_positions(x2, self.table, self.embed_dim, self.out_dtype)
        return out.reshape(*lead, self.embed_dim)

    # ---- torch forward: patch-grid positions generated in-kernel ----
    def __call__(self, normalized_coords=False):
        key = bool(normalized_coords)
        if key in self._cache:
            return self._cache[key]
        if self.num_patches >= (1 << 21):
            # float index math no longer provably exact -> fall back to fed positions
            grid = create_ndgrid(self.patches_resolution,
                                 normalized_coords=normalized_coords)
            enc = self.forward_with_x(grid)
        else:
            enc = _encode_patch_grid(self.table,
                                     self._dim_params(normalized_coords),
                                     self.num_patches, self.embed_dim,
                                     self.out_dtype)
        self._cache[key] = enc
        # TODO(synk): torch also re-homes the cached encoding across devices; that
        # device-transfer caching is a host-side concern and is omitted here.
        return enc


# ---------------------------------------------------------------------------
# pure-JAX reference for sanity checks
# ---------------------------------------------------------------------------
def _reference(x, freq_bands, embed_dim):
    feats = x[..., None] * freq_bands                      # (P, ndim, B)
    enc = jnp.concatenate([jnp.sin(feats), jnp.cos(feats)], axis=-1)
    enc = enc.reshape(enc.shape[0], -1)
    return enc[..., :embed_dim]


if __name__ == "__main__":
    # Case 1: 2D image grid 16x16, stride 2 -> 8x8 = 64 patches, embed_dim 32
    #         (num_bands = 8, feature width == embed_dim).
    mod2d = SinusoidalEmbed(size=[16, 16], stride=[2, 2], embed_dim=32, logspace=False)

    enc = jax.block_until_ready(mod2d(normalized_coords=False))
    assert enc.shape == (mod2d.num_patches, mod2d.embed_dim), enc.shape
    ref = _reference(create_ndgrid(mod2d.patches_resolution, normalized_coords=False),
                     mod2d.frequency_bands, mod2d.embed_dim)
    assert np.allclose(np.asarray(enc), np.asarray(ref), atol=1e-5, rtol=1e-5)

    enc_n = jax.block_until_ready(mod2d(normalized_coords=True))
    ref_n = _reference(create_ndgrid(mod2d.patches_resolution, normalized_coords=True),
                       mod2d.frequency_bands, mod2d.embed_dim)
    assert np.allclose(np.asarray(enc_n), np.asarray(ref_n), atol=1e-5, rtol=1e-5)

    # forward_with_x with deterministic random positions
    key = jax.random.PRNGKey(0)
    x = jax.random.uniform(key, (8, 2), jnp.float32, minval=-1.0, maxval=1.0)
    enc_x = jax.block_until_ready(mod2d.forward_with_x(x))
    ref_x = _reference(x, mod2d.frequency_bands, mod2d.embed_dim)
    assert enc_x.shape == (8, mod2d.embed_dim)
    assert np.allclose(np.asarray(enc_x), np.asarray(ref_x), atol=1e-5, rtol=1e-5)

    # Case 2: 3D grid with logspace bands, ragged tile (P=12 -> padded to 16) and
    #         embed_dim (28) not a multiple of 2*ndim (trimmed feature width).
    mod3d = SinusoidalEmbed(size=[6, 4, 4], stride=[2, 2, 2], embed_dim=28, logspace=True)
    enc3 = jax.block_until_ready(mod3d(normalized_coords=True))
    assert enc3.shape == (mod3d.num_patches, mod3d.embed_dim), enc3.shape
    ref3 = _reference(create_ndgrid(mod3d.patches_resolution, normalized_coords=True),
                      mod3d.frequency_bands, mod3d.embed_dim)
    assert np.allclose(np.asarray(enc3), np.asarray(ref3), atol=1e-5, rtol=1e-5)

    print("KERNEL_OK")
</pallas_src>

<mosaic_0001>
module attributes {stable_mosaic.version = 11 : i64} {
  func.func @_sinusoid_grid_kernel(%arg0: i32, %arg1: memref<3x32xf32, #tpu.memory_space<vmem>>, %arg2: memref<64x32xf32, #tpu.memory_space<vmem>>) attributes {dimension_semantics = [#tpu.dimension_semantics<parallel>], iteration_bounds = array<i64: 1>, scalar_prefetch = 0 : i64, scratch_operands = 0 : i64, tpu.core_type = #tpu.core_type<tc>, window_params = [{pipeline_mode = #tpu.pipeline_mode<synchronous>, transform_indices = @transform_0, window_bounds = array<i64: 3, 32>}, {transform_indices = @transform_1, window_bounds = array<i64: 64, 32>}]} {
    %c0 = arith.constant 0 : index
    %c0_0 = arith.constant 0 : index
    %0 = vector.load %arg1[%c0, %c0_0] : memref<3x32xf32, #tpu.memory_space<vmem>>, vector<3x32xf32>
    %1 = tpu.iota {dimensions = array<i32: 0>} : vector<64x1xi32>
    %2 = arith.sitofp %1 : vector<64x1xi32> to vector<64x1xf32>
    %c64_i32 = arith.constant 64 : i32
    %3 = arith.muli %arg0, %c64_i32 : i32
    %4 = arith.sitofp %3 : i32 to f32
    %5 = vector.broadcast %4 : f32 to vector<64x1xf32>
    %6 = arith.addf %2, %5 : vector<64x1xf32>
    %7 = vector.extract_strided_slice %0 {offsets = [0, 0], sizes = [1, 32], strides = [1, 1]} : vector<3x32xf32> to vector<1x32xf32>
    %cst = arith.constant 5.000000e-01 : f32
    %8 = vector.broadcast %cst : f32 to vector<64x1xf32>
    %9 = arith.addf %6, %8 : vector<64x1xf32>
    %cst_1 = arith.constant 1.250000e-01 : f32
    %10 = vector.broadcast %cst_1 : f32 to vector<64x1xf32>
    %11 = arith.mulf %9, %10 : vector<64x1xf32>
    %12 = math.floor %11 : vector<64x1xf32>
    %cst_2 = arith.constant 8.000000e+00 : f32
    %13 = vector.broadcast %cst_2 : f32 to vector<64x1xf32>
    %14 = arith.mulf %13, %12 : vector<64x1xf32>
    %15 = arith.subf %6, %14 : vector<64x1xf32>
    %cst_3 = arith.constant 1.000000e+00 : f32
    %16 = vector.broadcast %cst_3 : f32 to vector<64x1xf32>
    %17 = arith.mulf %15, %16 : vector<64x1xf32>
    %cst_4 = arith.constant 0.000000e+00 : f32
    %18 = vector.broadcast %cst_4 : f32 to vector<64x1xf32>
    %19 = arith.addf %17, %18 : vector<64x1xf32>
    %20 = vector.extract_strided_slice %0 {offsets = [1, 0], sizes = [1, 32], strides = [1, 1]} : vector<3x32xf32> to vector<1x32xf32>
    %21 = vector.broadcast %19 : vector<64x1xf32> to vector<64x32xf32>
    %22 = vector.broadcast %20 : vector<1x32xf32> to vector<64x32xf32>
    %23 = arith.mulf %21, %22 : vector<64x32xf32>
    %24 = vector.broadcast %7 : vector<1x32xf32> to vector<64x32xf32>
    %25 = arith.addf %24, %23 : vector<64x32xf32>
    %cst_5 = arith.constant 5.000000e-01 : f32
    %26 = vector.broadcast %cst_5 : f32 to vector<64x1xf32>
    %27 = arith.addf %6, %26 : vector<64x1xf32>
    %cst_6 = arith.constant 1.250000e-01 : f32
    %28 = vector.broadcast %cst_6 : f32 to vector<64x1xf32>
    %29 = arith.mulf %27, %28 : vector<64x1xf32>
    %30 = math.floor %29 : vector<64x1xf32>
    %cst_7 = arith.constant 5.000000e-01 : f32
    %31 = vector.broadcast %cst_7 : f32 to vector<64x1xf32>
    %32 = arith.addf %30, %31 : vector<64x1xf32>
    %cst_8 = arith.constant 1.250000e-01 : f32
    %33 = vector.broadcast %cst_8 : f32 to vector<64x1xf32>
    %34 = arith.mulf %32, %33 : vector<64x1xf32>
    %35 = math.floor %34 : vector<64x1xf32>
    %cst_9 = arith.constant 8.000000e+00 : f32
    %36 = vector.broadcast %cst_9 : f32 to vector<64x1xf32>
    %37 = arith.mulf %36, %35 : vector<64x1xf32>
    %38 = arith.subf %30, %37 : vector<64x1xf32>
    %cst_10 = arith.constant 1.000000e+00 : f32
    %39 = vector.broadcast %cst_10 : f32 to vector<64x1xf32>
    %40 = arith.mulf %38, %39 : vector<64x1xf32>
    %cst_11 = arith.constant 0.000000e+00 : f32
    %41 = vector.broadcast %cst_11 : f32 to vector<64x1xf32>
    %42 = arith.addf %40, %41 : vector<64x1xf32>
    %43 = vector.extract_strided_slice %0 {offsets = [2, 0], sizes = [1, 32], strides = [1, 1]} : vector<3x32xf32> to vector<1x32xf32>
    %44 = vector.broadcast %42 : vector<64x1xf32> to vector<64x32xf32>
    %45 = vector.broadcast %43 : vector<1x32xf32> to vector<64x32xf32>
    %46 = arith.mulf %44, %45 : vector<64x32xf32>
    %47 = arith.addf %25, %46 : vector<64x32xf32>
    %48 = math.sin %47 : vector<64x32xf32>
    %c0_12 = arith.constant 0 : index
    %c0_13 = arith.constant 0 : index
    %49 = vector.load %arg2[%c0_12, %c0_13] : memref<64x32xf32, #tpu.memory_space<vmem>>, vector<64x32xf32>
    tpu.vector_store %arg2[%c0_12, %c0_13], %48 {strides = array<i32>} : memref<64x32xf32, #tpu.memory_space<vmem>>, vector<64x32xf32>,
    return
  }
  func.func @transform_0(%arg0: i32) -> (i32, i32) {
    %c0_i32 = arith.constant 0 : i32
    %c0_i32_0 = arith.constant 0 : i32
    %c0_i32_1 = arith.constant 0 : i32
    return %c0_i32, %c0_i32_0 : i32, i32
  }
  func.func @transform_1(%arg0: i32) -> (i32, i32) {
    %c0_i32 = arith.constant 0 : i32
    %c0_i32_0 = arith.constant 0 : i32
    return %arg0, %c0_i32 : i32, i32
  }
}

</mosaic_0001>

<bundles_post_ra>
// kernel: tpu_custom_call.1
= control target key start
LH: loop header
LB: loop body
LE: loop exit
PB: predicated region body
PF: predicated region fallthrough
CT: control target
= control target key end

     0   :  { %6 = vsyncpa [#allocation3], 0  ;;  %s1494_s9 = smov [#allocation2]   ;;  %s2876_s0 = inlined_call_operand.hbm [shape: f32[3,32], index: 0, kind: input, shape index: {}]   ;;  %s2877_s1 = inlined_call_operand.vmem [shape: f32[64,32], index: 1, kind: output, shape index: {}]  }
   0x1   :  { %s12_s8 = sshll.u32 %s2876_s0, 4  ;;  %s14_s10 = sshll.u32 %s1494_s9, 4  ;;  %s13_s8 = int_to_ptr.hbm [resolvable:$true] %s12_s8  ;;  %s15_s10 = int_to_ptr.vmem [resolvable:$true] %s14_s10 }
   0x2   :  { %17 = dma.hbm_to_vmem [thread:$0]  %s13_s8, 64, %s15_s10, [#allocation3]  }
   0x3   :  { %1492 = dma.done.wait [#allocation3], 64  }
   0x4   :  { %1493 = vsyncadd [#allocation3], 4294967232  ;;  %v23_v0 = vlaneseq  ;;  %v22_v20 = vld [vmem:[#allocation2] sm:$0x7] }
   0x5   :  { %v1520_v24 = vperm.slane %v22_v20, 1  ;;  %v1522_v29 = vperm.slane %v22_v20, 0  ;;  %v1528_v41 = vperm.slane %v22_v20, 2 }
   0x6   :  { %v1515_v1 = vshrl.u32 %v23_v0, 7 }
   0x8   :  { %v25_v2 = vadd.s32 8, %v1515_v1  ;;  %v26_v3 = vadd.s32 16, %v1515_v1  ;;  %v32_v4 = vcvt.s32.f32 %v1515_v1  ;;  %v1547_v0 = vadd.s32 24, %v1515_v1 }
   0xa   :  { %v33_v5 = vcvt.s32.f32 %v25_v2  ;;  %v34_v6 = vcvt.s32.f32 %v26_v3  ;;  %v51_v7 = vadd.f32 0.5, %v32_v4 }
   0xc   :  { %v52_v8 = vadd.f32 0.5, %v33_v5  ;;  %v53_v9 = vadd.f32 0.5, %v34_v6  ;;  %v59_v10 = vmul.f32 0.125, %v51_v7 }
   0xe   :  { %v60_v11 = vmul.f32 0.125, %v52_v8  ;;  %v61_v12 = vmul.f32 0.125, %v53_v9  ;;  %v67_v13 = vfloor.f32 %v59_v10  ;;  %v2890_v8 = vmov 2475754826  }
   0xf   :  { %v2887_v10 = vmov 2131351028  }
  0x10   :  { %v68_v14 = vfloor.f32 %v60_v11  ;;  %v69_v15 = vfloor.f32 %v61_v12  ;;  %v75_v16 = vmul.f32 8.0, %v67_v13  ;;  %v117_v18 = vadd.f32 0.5, %v67_v13 }
  0x11   :  { %v2885_v12 = vmov 2102212464  }
  0x12   :  { %v76_v17 = vmul.f32 8.0, %v68_v14  ;;  %v118_v19 = vadd.f32 0.5, %v68_v14  ;;  %v83_v21 = vsub.f32 %v32_v4, %v75_v16  ;;  %v119_v22 = vadd.f32 0.5, %v69_v15 }
  0x13   :  { %v125_v25 = vmul.f32 0.125, %v117_v18  ;;  %v77_v37 = vmul.f32 8.0, %v69_v15 }
  0x14   :  { %v84_v23 = vsub.f32 %v33_v5, %v76_v17  ;;  %v126_v26 = vmul.f32 0.125, %v118_v19  ;;  %v127_v30 = vmul.f32 0.125, %v119_v22  ;;  %v100_v31 = vmul.f32 %v1520_v24, %v83_v21 }
  0x15   :  { %v133_v27 = vfloor.f32 %v125_v25  ;;  %v85_v44 = vsub.f32 %v34_v6, %v77_v37  ;;  %v2892_v6 = vmov 683565275   ;;  %v35_v37 = vcvt.s32.f32 %v1547_v0 }
  0x16   :  { %v134_v28 = vfloor.f32 %v126_v26  ;;  %v101_v32 = vmul.f32 %v1520_v24, %v84_v23  ;;  %v135_v38 = vfloor.f32 %v127_v30  ;;  %v109_v39 = vadd.f32 %v1522_v29, %v100_v31 }
  0x17   :  { %v141_v33 = vmul.f32 8.0, %v133_v27  ;;  %v102_v49 = vmul.f32 %v1520_v24, %v85_v44  ;;  %v2881_v23 = vmov 1326507024  }
  0x18   :  { %v142_v34 = vmul.f32 8.0, %v134_v28  ;;  %v110_v40 = vadd.f32 %v1522_v29, %v101_v32  ;;  %v143_v45 = vmul.f32 8.0, %v135_v38 }
  0x19   :  { %v149_v35 = vsub.f32 %v67_v13, %v141_v33  ;;  %v111_v56 = vadd.f32 %v1522_v29, %v102_v49 }
  0x1a   :  { %v150_v36 = vsub.f32 %v68_v14, %v142_v34  ;;  %v151_v50 = vsub.f32 %v69_v15, %v143_v45  ;;  %v2883_v14 = vmov 920167782  }
  0x1b   :  { %v166_v42 = vmul.f32 %v1528_v41, %v149_v35 }
  0x1c   :  { %v167_v43 = vmul.f32 %v1528_v41, %v150_v36  ;;  %v168_v57 = vmul.f32 %v1528_v41, %v151_v50 }
  0x1d   :  { %v1532_v46 = vadd.f32 %v166_v42, %v109_v39 }
  0x1e   :  { %v1534_v47 = vadd.f32 %v167_v43, %v110_v40  ;;  %v1544_v62 = vadd.f32 %v168_v57, %v111_v56 }
  0x1f   :  { %v185_v48 = vand.u32 2139095040, %v1532_v46  ;;  %v2880_v53 = vand.u32 2147483647, %v1532_v46 }
  0x20   :  { %2905 = vst [vmem:[#allocation5_spill] sm:$0xff] %v1534_v47  ;;  %v340_v51 = vand.u32 2139095040, %v1534_v47  ;;  %v2879_v16 = vand.u32 2147483647, %v1534_v47  ;;  %v495_v17 = vand.u32 2139095040, %v1544_v62 }
  0x21   :  { %v186_v52 = vshrl.u32 %v185_v48, 23  ;;  %v189_v60 = vand.u32 8388607, %v2880_v53 }
  0x22   :  { %v341_v54 = vshrl.u32 %v340_v51, 23  ;;  %v344_v36 = vand.u32 8388607, %v2879_v16  ;;  %v496_v40 = vshrl.u32 %v495_v17, 23 }
  0x23   :  { %v1436_v55 = vadd.s32 4294967169, %v186_v52  ;;  %v190_v3 = vor.u32 8388608, %v189_v60 }
  0x24   :  { %v1439_v58 = vadd.s32 4294967169, %v341_v54  ;;  %v345_v56 = vor.u32 8388608, %v344_v36 }
  0x25   :  { %v192_v59 = vadd.s32 1, %v1436_v55  ;;  %v1572_v26 = vshll.u32 %v190_v3, 8 }
  0x26   :  { %v347_v61 = vadd.s32 1, %v1439_v58 }
  0x27   :  { %vm193_vm0 = vcmp.gt.s32.totalorder %v192_v59, 0  ;;  %v231_v44 = vand.u32 65535, %v1572_v26  ;;  %v232_v45 = vshrl.u32 %v1572_v26, 16 }
  0x28   :  { %v194_v63 = vsel %vm193_vm0, %v192_v59, 0  ;;  %vm348_vm1 = vcmp.gt.s32.totalorder %v347_v61, 0  ;;  %v1442_v59 = vadd.s32 4294967169, %v496_v40 }
  0x29   :  { %v196_v2 = vand.u32 31, %v194_v63  ;;  %v1549_v4 = vshrl.u32 %v194_v63, 5  ;;  %v349_v21 = vsel %vm348_vm1, %v347_v61, 0 }
  0x2a   :  { %v351_v33 = vand.u32 31, %v349_v21  ;;  %v1611_v57 = vshrl.u32 %v349_v21, 5 }
  0x2b   :  { %v1551_v5 = vsub.s32 32, %v196_v2  ;;  %v199_v7 = vshll.u32 %v2892_v6, %v196_v2  ;;  %v202_v9 = vshll.u32 %v2890_v8, %v196_v2  ;;  %v205_v11 = vshll.u32 %v2887_v10, %v196_v2 }
  0x2c   :  { %v208_v13 = vshll.u32 %v2885_v12, %v196_v2  ;;  %v211_v15 = vshll.u32 %v2883_v14, %v196_v2  ;;  %vm214_vm2 = vcmp.lt.s32.totalorder %v1549_v4, 1  ;;  %vm217_vm3 = vcmp.lt.s32.totalorder %v1549_v4, 4 }
  0x2d   :  { %v200_v18 = vshrl.u32 %v2890_v8, %v1551_v5  ;;  %v203_v19 = vshrl.u32 %v2887_v10, %v1551_v5  ;;  %v206_v20 = vshrl.u32 %v2885_v12, %v1551_v5  ;;  %v209_v22 = vshrl.u32 %v2883_v14, %v1551_v5 }
  0x2e   :  { %v212_v25 = vshrl.u32 %v2881_v23, %v1551_v5  ;;  %vm216_vm4 = vcmp.lt.s32.totalorder %v1549_v4, 3  ;;  %vm215_vm5 = vcmp.lt.s32.totalorder %v1549_v4, 2  ;;  %v1609_v50 = vsub.s32 32, %v351_v33 }
  0x2f   :  { %v1574_v27 = vor.u32 %v200_v18, %v199_v7  ;;  %v1576_v28 = vor.u32 %v203_v19, %v202_v9  ;;  %v1578_v30 = vor.u32 %v206_v20, %v205_v11  ;;  %v210_v31 = vor.u32 %v209_v22, %v208_v13 }
  0x30   :  { %v213_v32 = vor.u32 %v212_v25, %v211_v15  ;;  %v354_v58 = vshll.u32 %v2892_v6, %v351_v33  ;;  %v357_v2 = vshll.u32 %v2890_v8, %v351_v33  ;;  %v355_v11 = vshrl.u32 %v2890_v8, %v1609_v50 }
  0x31   :  { %v222_v34 = vsel %vm214_vm2, %v1574_v27, %v1576_v28  ;;  %v226_v35 = vsel %vm214_vm2, %v1576_v28, %v1578_v30  ;;  %v223_v38 = vsel %vm217_vm3, %v210_v31, 920167782  ;;  %v358_v17 = vshrl.u32 %v2887_v10, %v1609_v50 }
  0x32   :  { %v227_v39 = vsel %vm217_vm3, %v213_v32, 1326507024  ;;  %v224_v42 = vsel %vm216_vm4, %v1578_v30, %v223_v38  ;;  %v360_v18 = vshll.u32 %v2887_v10, %v351_v33  ;;  %v361_v22 = vshrl.u32 %v2885_v12, %v1609_v50 }
  0x33   :  { %v228_v43 = vsel %vm216_vm4, %v210_v31, %v227_v39  ;;  %v225_v48 = vsel %vm215_vm5, %v222_v34, %v224_v42  ;;  %v363_v32 = vshll.u32 %v2885_v12, %v351_v33  ;;  %v2895_v34 = vmov 0  }
  0x34   :  { %v229_v49 = vsel %vm215_vm5, %v226_v35, %v228_v43  ;;  %v255_v54 = vand.u32 65535, %v225_v48  ;;  %v256_v55 = vshrl.u32 %v225_v48, 16  ;;  %v364_v38 = vshrl.u32 %v2883_v14, %v1609_v50 }
  0x35   :  { %v233_v51 = vand.u32 65535, %v229_v49  ;;  %v234_v52 = vshrl.u32 %v229_v49, 16  ;;  %v1636_v40 = vor.u32 %v355_v11, %v354_v58  ;;  %v366_v42 = vshll.u32 %v2883_v14, %v351_v33 }
  0x36   :  { %v257_v3 = vmul.u32 %v255_v54, %v231_v44  ;;  %v258_v7 = vmul.u32 %v256_v55, %v231_v44  ;;  %v1619_v9 = vmul.u32 %v255_v54, %v232_v45  ;;  %v260_v19 = vmul.u32 %v256_v55, %v232_v45 }
  0x37   :  { %v235_v60 = vmul.u32 %v233_v51, %v231_v44  ;;  %v1614_v61 = vmul.u32 %v234_v52, %v231_v44  ;;  %v1616_v63 = vmul.u32 %v233_v51, %v232_v45  ;;  %v238_v25 = vmul.u32 %v234_v52, %v232_v45 }
  0x38   :  { %v261_v20 = vshll.u32 %v258_v7, 16  ;;  %v263_v21 = vshll.u32 %v1619_v9, 16  ;;  %v1641_v44 = vor.u32 %v358_v17, %v357_v2  ;;  %v1643_v45 = vor.u32 %v361_v22, %v360_v18 }
  0x39   :  { %v239_v13 = vshll.u32 %v1614_v61, 16  ;;  %v241_v15 = vshll.u32 %v1616_v63, 16  ;;  %v365_v51 = vor.u32 %v364_v38, %v363_v32  ;;  %v367_v52 = vshrl.u32 %v2881_v23, %v1609_v50 }
  0x3a   :  { %vm265_vm7 = vc.u32 %v257_v3, %v261_v20  ;;  %v267_v36 = vadd.s32 %v261_v20, %v257_v3  ;;  %vm369_vm10 = vcmp.lt.s32.totalorder %v1611_v57, 1  ;;  %vm371_vm11 = vcmp.lt.s32.totalorder %v1611_v57, 3 }
  0x3b   :  { %vm243_vm6 = vc.u32 %v235_v60, %v239_v13  ;;  %v245_v31 = vadd.s32 %v239_v13, %v235_v60  ;;  %v266_v39 = vsel %vm265_vm7, 1, %v2895_v34  ;;  %v1651_v33 = vshll.u32 %v345_v56, 8 }
  0x3c   :  { %v244_v35 = vsel %vm243_vm6, 1, %v2895_v34  ;;  %v268_v43 = vadd.s32 %v266_v39, %v260_v19  ;;  %vm269_vm9 = vc.u32 %v267_v36, %v263_v21  ;;  %v368_v55 = vor.u32 %v367_v52, %v366_v42 }
  0x3d   :  { %vm247_vm8 = vc.u32 %v245_v31, %v241_v15  ;;  %v246_v48 = vadd.s32 %v244_v35, %v238_v25  ;;  %v270_v49 = vsel %vm269_vm9, 1, %v2895_v34  ;;  %vm370_vm12 = vcmp.lt.s32.totalorder %v1611_v57, 2 }
  0x3e   :  { %v248_v54 = vsel %vm247_vm8, 1, %v2895_v34  ;;  %vm372_vm13 = vcmp.lt.s32.totalorder %v1611_v57, 4  ;;  %v502_v58 = vadd.s32 1, %v1442_v59  ;;  %v262_v60 = vshrl.u32 %v258_v7, 16 }
  0x3f   :  { %v272_v2 = vadd.s32 %v270_v49, %v268_v43  ;;  %v377_v3 = vsel %vm369_vm10, %v1636_v40, %v1641_v44  ;;  %v378_v11 = vsel %vm372_vm13, %v365_v51, 920167782  ;;  %v240_v13 = vshrl.u32 %v1614_v61, 16 }
  0x40   :  { %v250_v56 = vadd.s32 %v248_v54, %v246_v48  ;;  %v379_v15 = vsel %vm371_vm11, %v1643_v45, %v378_v11  ;;  %v381_v59 = vsel %vm369_vm10, %v1641_v44, %v1643_v45  ;;  %v382_v17 = vsel %vm372_vm13, %v368_v55, 1326507024 }
  0x41   :  { %v380_v7 = vsel %vm370_vm12, %v377_v3, %v379_v15  ;;  %v386_v18 = vand.u32 65535, %v1651_v33  ;;  %v387_v61 = vshrl.u32 %v1651_v33, 16  ;;  %v198_v19 = vshrl.u32 %v2892_v6, %v1551_v5 }
  0x42   :  { %v219_v20 = vsel %vm217_vm3, %v1578_v30, 2102212464  ;;  %v383_v22 = vsel %vm371_vm11, %v365_v51, %v382_v17  ;;  %v410_v25 = vand.u32 65535, %v380_v7  ;;  %v264_v31 = vshrl.u32 %v1619_v9, 16 }
  0x43   :  { %v273_v32 = vadd.s32 %v272_v2, %v262_v60  ;;  %v384_v35 = vsel %vm370_vm12, %v381_v59, %v383_v22  ;;  %v411_v38 = vshrl.u32 %v380_v7, 16  ;;  %v242_v39 = vshrl.u32 %v1616_v63, 16 }
  0x44   :  { %v251_v42 = vadd.s32 %v250_v56, %v240_v13  ;;  %v388_v43 = vand.u32 65535, %v384_v35  ;;  %v389_v5 = vshrl.u32 %v384_v35, 16  ;;  %v54_v48 = vadd.f32 0.5, %v35_v37 }
  0x45   :  { %v413_v30 = vmul.u32 %v411_v38, %v386_v18  ;;  %v414_v49 = vmul.u32 %v410_v25, %v387_v61  ;;  %vm503_vm14 = vcmp.gt.s32.totalorder %v502_v58, 0  ;;  %v218_v51 = vsel %vm214_vm2, %v198_v19, %v1574_v27 }
  0x46   :  { %v390_v52 = vmul.u32 %v388_v43, %v386_v18  ;;  %v391_v54 = vmul.u32 %v389_v5, %v386_v18  ;;  %v412_v55 = vmul.u32 %v410_v25, %v386_v18  ;;  %v220_v63 = vsel %vm216_vm4, %v1576_v28, %v219_v20 }
  0x47   :  { %v274_v60 = vadd.s32 %v273_v32, %v264_v31  ;;  %v392_v2 = vmul.u32 %v388_v43, %v387_v61  ;;  %v416_v3 = vshll.u32 %v413_v30, 16  ;;  %v1694_v11 = vadd.s32 %v251_v42, %v242_v39 }
  0x48   :  { %v1698_v13 = vadd.s32 %v267_v36, %v263_v21  ;;  %v393_v56 = vmul.u32 %v389_v5, %v387_v61  ;;  %v394_v15 = vshll.u32 %v391_v54, 16  ;;  %v415_v27 = vmul.u32 %v411_v38, %v387_v61 }
  0x49   :  { %v396_v59 = vshll.u32 %v392_v2, 16  ;;  %v418_v7 = vshll.u32 %v414_v49, 16  ;;  %v504_v17 = vsel %vm503_vm14, %v502_v58, 0  ;;  %v221_v18 = vsel %vm215_vm5, %v218_v51, %v220_v63 }
  0x4a   :  { %vm398_vm15 = vc.u32 %v390_v52, %v394_v15  ;;  %v400_v28 = vadd.s32 %v394_v15, %v390_v52  ;;  %vm420_vm0 = vc.u32 %v412_v55, %v416_v3  ;;  %v278_v19 = vadd.s32 1, %v274_v60 }
  0x4b   :  { %v399_v20 = vsel %vm398_vm15, 1, %v2895_v34  ;;  %v421_v9 = vsel %vm420_vm0, 1, %v2895_v34  ;;  %v422_v21 = vadd.s32 %v416_v3, %v412_v55  ;;  %vm277_vm1 = vc.u32 %v1694_v11, %v1698_v13 }
  0x4c   :  { %v353_v36 = vshrl.u32 %v2892_v6, %v1609_v50  ;;  %v401_v61 = vadd.s32 %v399_v20, %v393_v56  ;;  %vm402_vm2 = vc.u32 %v400_v28, %v396_v59  ;;  %v417_v58 = vshrl.u32 %v413_v30, 16 }
  0x4d   :  { %v403_v4 = vsel %vm402_vm2, 1, %v2895_v34  ;;  %v423_v22 = vadd.s32 %v421_v9, %v415_v27  ;;  %vm424_vm3 = vc.u32 %v422_v21, %v418_v7  ;;  %v275_v25 = vmul.u32 %v1572_v26, %v221_v18 }
  0x4e   :  { %v395_v31 = vshrl.u32 %v391_v54, 16  ;;  %v405_v32 = vadd.s32 %v403_v4, %v401_v61  ;;  %v425_v35 = vsel %vm424_vm3, 1, %v2895_v34  ;;  %v279_v38 = vsel %vm277_vm1, %v278_v19, %v274_v60 }
  0x4f   :  { %v374_v39 = vsel %vm372_vm13, %v1643_v45, 2102212464  ;;  %v427_v42 = vadd.s32 %v425_v35, %v423_v22  ;;  %v506_v50 = vand.u32 31, %v504_v17  ;;  %v1716_v43 = vadd.s32 32, %v1515_v1 }
  0x50   :  { %v62_v5 = vmul.f32 0.125, %v54_v48  ;;  %v373_v30 = vsel %vm369_vm10, %v353_v36, %v1636_v40  ;;  %v419_v26 = vshrl.u32 %v414_v49, 16  ;;  %v1721_v52 = vadd.s32 %v279_v38, %v275_v25 }
  0x51   :  { %v428_v51 = vadd.s32 %v427_v42, %v417_v58  ;;  %v375_v54 = vsel %vm371_vm11, %v1641_v44, %v374_v39  ;;  %v397_v55 = vshrl.u32 %v392_v2, 16  ;;  %v406_v45 = vadd.s32 %v405_v32, %v395_v31 }
  0x52   :  { %v1726_v63 = vsub.s32 32, %v506_v50  ;;  %v1729_v60 = vadd.s32 40, %v1515_v1  ;;  %v36_v48 = vcvt.s32.f32 %v1716_v43  ;;  %v1732_v3 = vfloor.f32 %v62_v5 }
  0x53   :  { %v376_v40 = vsel %vm370_vm12, %v373_v30, %v375_v54  ;;  %v429_v49 = vadd.s32 %v428_v51, %v419_v26  ;;  %v2878_v56 = vand.u32 2147483647, %v1544_v62  ;;  %v281_v15 = vadd.s32 536870912, %v1721_v52 }
  0x54   :  { %v1738_v44 = vadd.s32 %v406_v45, %v397_v55  ;;  %v1740_v2 = vadd.s32 %v422_v21, %v418_v7  ;;  %v1742_v59 = vshrl.u32 %v504_v17, 5  ;;  %v512_v27 = vshll.u32 %v2890_v8, %v506_v50 }
  0x55   :  { %v513_v18 = vshrl.u32 %v2887_v10, %v1726_v63  ;;  %v518_v28 = vshll.u32 %v2885_v12, %v506_v50  ;;  %v519_v57 = vshrl.u32 %v2883_v14, %v1726_v63  ;;  %v515_v19 = vshll.u32 %v2887_v10, %v506_v50 }
  0x56   :  { %v516_v20 = vshrl.u32 %v2885_v12, %v1726_v63  ;;  %v521_v7 = vshll.u32 %v2883_v14, %v506_v50  ;;  %v522_v17 = vshrl.u32 %v2881_v23, %v1726_v63  ;;  %v1757_v9 = vadd.s32 48, %v1515_v1 }
  0x57   :  { %v1760_v21 = vadd.s32 56, %v1515_v1  ;;  %v433_v36 = vadd.s32 1, %v429_v49  ;;  %v499_v61 = vand.u32 8388607, %v2878_v56  ;;  %v120_v4 = vadd.f32 0.5, %v1732_v3 }
  0x58   :  { %vm432_vm4 = vc.u32 %v1738_v44, %v1740_v2  ;;  %v509_v58 = vshll.u32 %v2892_v6, %v506_v50  ;;  %v510_v22 = vshrl.u32 %v2890_v8, %v1726_v63  ;;  %v55_v25 = vadd.f32 0.5, %v36_v48 }
  0x59   :  { %v1772_v31 = vshrl.u32 %v281_v15, 30  ;;  %v430_v1 = vmul.u32 %v1651_v33, %v376_v40  ;;  %v520_v32 = vor.u32 %v519_v57, %v518_v28  ;;  %v1775_v35 = vor.u32 %v513_v18, %v512_v27 }
  0x5a   :  { %v1777_v38 = vor.u32 %v516_v20, %v515_v19  ;;  %v523_v39 = vor.u32 %v522_v17, %v521_v7  ;;  %vm527_vm5 = vcmp.lt.s32.totalorder %v1742_v59, 4  ;;  %v37_v42 = vcvt.s32.f32 %v1729_v60 }
  0x5b   :  { %v434_v50 = vsel %vm432_vm4, %v433_v36, %v429_v49  ;;  %v500_v5 = vor.u32 8388608, %v499_v61  ;;  %vm524_vm6 = vcmp.lt.s32.totalorder %v1742_v59, 1  ;;  %v38_v30 = vcvt.s32.f32 %v1757_v9 }
  0x5c   :  { %v128_v26 = vmul.f32 0.125, %v120_v4  ;;  %v1783_v51 = vor.u32 %v510_v22, %v509_v58  ;;  %vm526_vm7 = vcmp.lt.s32.totalorder %v1742_v59, 3  ;;  %v39_v33 = vcvt.s32.f32 %v1760_v21 }
  0x5d   :  { %v63_v54 = vmul.f32 0.125, %v55_v25  ;;  %vm525_vm8 = vcmp.lt.s32.totalorder %v1742_v59, 2  ;;  %v533_v55 = vsel %vm527_vm5, %v520_v32, 920167782  ;;  %v283_v45 = vshll.u32 %v1772_v31, 30 }
  0x5e   :  { %v435_v40 = vadd.s32 %v434_v50, %v430_v1  ;;  %v536_v49 = vsel %vm524_vm6, %v1775_v35, %v1777_v38  ;;  %v537_v15 = vsel %vm527_vm5, %v523_v39, 1326507024  ;;  %v78_v27 = vmul.f32 8.0, %v1732_v3 }
  0x5f   :  { %v538_v18 = vsel %vm526_vm7, %v520_v32, %v537_v15  ;;  %v1800_v28 = vshll.u32 %v500_v5, 8  ;;  %v136_v57 = vfloor.f32 %v128_v26  ;;  %v532_v19 = vsel %vm524_vm6, %v1783_v51, %v1775_v35 }
  0x60   :  { %v534_v20 = vsel %vm526_vm7, %v1777_v38, %v533_v55  ;;  %v539_v7 = vsel %vm525_vm8, %v536_v49, %v538_v18  ;;  %v56_v17 = vadd.f32 0.5, %v37_v42  ;;  %v57_v36 = vadd.f32 0.5, %v38_v30 }
  0x61   :  { %v58_v61 = vadd.f32 0.5, %v39_v33  ;;  %v1817_v4 = vfloor.f32 %v63_v54  ;;  %v1820_v58 = vsub.s32 %v1721_v52, %v283_v45  ;;  %v436_v22 = vadd.s32 536870912, %v435_v40 }
  0x62   :  { %v535_v25 = vsel %vm525_vm8, %v532_v19, %v534_v20  ;;  %v541_v1 = vand.u32 65535, %v1800_v28  ;;  %v544_v32 = vshrl.u32 %v539_v7, 16  ;;  %v86_v39 = vsub.f32 %v35_v37, %v78_v27 }
  0x63   :  { %v144_v50 = vmul.f32 8.0, %v136_v57  ;;  %v64_v5 = vmul.f32 0.125, %v56_v17  ;;  %v65_v26 = vmul.f32 0.125, %v57_v36  ;;  %v66_v55 = vmul.f32 0.125, %v58_v61 }
  0x64   :  { %v121_v54 = vadd.f32 0.5, %v1817_v4  ;;  %v286_v49 = vsub.s32 0, %v1820_v58  ;;  %v1829_v52 = vshrl.u32 %v436_v22, 30  ;;  %v566_v45 = vshrl.u32 %v535_v25, 16 }
  0x65   :  { %vm285_vm9 = vcmp.lt.s32.totalorder %v1820_v58, 0  ;;  %v542_v15 = vshrl.u32 %v1800_v28, 16  ;;  %v543_v18 = vand.u32 65535, %v539_v7  ;;  %v1833_v19 = vmul.u32 %v544_v32, %v541_v1 }
  0x66   :  { %v103_v0 = vmul.f32 %v1520_v24, %v86_v39  ;;  %v152_v37 = vsub.f32 %v1732_v3, %v144_v50  ;;  %v565_v27 = vand.u32 65535, %v535_v25  ;;  %v1837_v57 = vfloor.f32 %v64_v5 }
  0x67   :  { %v1839_v20 = vfloor.f32 %v65_v26  ;;  %v1841_v17 = vfloor.f32 %v66_v55  ;;  %v79_v36 = vmul.f32 8.0, %v1817_v4  ;;  %v287_v61 = vsel %vm285_vm9, %v286_v49, %v1820_v58 }
  0x68   :  { %v438_v22 = vshll.u32 %v1829_v52, 30  ;;  %v1846_v7 = vmul.u32 %v566_v45, %v541_v1  ;;  %v129_v56 = vmul.f32 0.125, %v121_v54  ;;  %v545_v16 = vmul.u32 %v543_v18, %v541_v1 }
  0x69   :  { %v1848_v39 = vmul.u32 %v543_v18, %v542_v15  ;;  %v549_v3 = vshll.u32 %v1833_v19, 16  ;;  %v112_v25 = vadd.f32 %v1522_v29, %v103_v0  ;;  %v169_v50 = vmul.f32 %v1528_v41, %v152_v37 }
  0x6a   :  { %v567_v5 = vmul.u32 %v565_v27, %v541_v1  ;;  %v1853_v26 = vmul.u32 %v565_v27, %v542_v15  ;;  %v80_v55 = vmul.f32 8.0, %v1837_v57  ;;  %v288_v49 = vclz %v287_v61 }
  0x6b   :  { %v81_v53 = vmul.f32 8.0, %v1839_v20  ;;  %v82_v23 = vmul.f32 8.0, %v1841_v17  ;;  %v1858_v54 = vsub.s32 %v435_v40, %v438_v22  ;;  %v571_v18 = vshll.u32 %v1846_v7, 16 }
  0x6c   :  { %v137_v14 = vfloor.f32 %v129_v56  ;;  %v551_v12 = vshll.u32 %v1848_v39, 16  ;;  %vm553_vm10 = vc.u32 %v545_v16, %v549_v3  ;;  %v555_v0 = vadd.s32 %v549_v3, %v545_v16 }
  0x6d   :  { %v87_v1 = vsub.f32 %v36_v48, %v79_v36  ;;  %v1864_v37 = vadd.f32 %v169_v50, %v112_v25  ;;  %v573_v27 = vshll.u32 %v1853_v26, 16  ;;  %vm575_vm11 = vc.u32 %v567_v5, %v571_v18 }
  0x6e   :  { %v88_v61 = vsub.f32 %v37_v42, %v80_v55  ;;  %v1437_v40 = vadd.s32 4294967294, %v288_v49  ;;  %v548_v22 = vmul.u32 %v544_v32, %v542_v15  ;;  %v1869_v10 = vadd.s32 %v571_v18, %v567_v5 }
  0x6f   :  { %2906 = vst [vmem:[#allocation6_spill] sm:$0xff] %v1864_v37  ;;  %v89_v56 = vsub.f32 %v38_v30, %v81_v53  ;;  %v441_v16 = vsub.s32 0, %v1858_v54  ;;  %v554_v43 = vsel %vm553_vm10, 1, %v2895_v34  ;;  %v570_v48 = vmul.u32 %v566_v45, %v542_v15 }
  0x70   :  { %v145_v36 = vmul.f32 8.0, %v137_v14  ;;  %vm440_vm12 = vcmp.lt.s32.totalorder %v1858_v54, 0  ;;  %vm557_vm13 = vc.u32 %v555_v0, %v551_v12  ;;  %v576_v3 = vsel %vm575_vm11, 1, %v2895_v34 }
  0x71   :  { %v90_v60 = vsub.f32 %v39_v33, %v82_v23  ;;  %v104_v42 = vmul.f32 %v1520_v24, %v87_v1  ;;  %vm579_vm14 = vc.u32 %v1869_v10, %v573_v27  ;;  %v650_v53 = vand.u32 2139095040, %v1864_v37 }
  0x72   :  { %v105_v9 = vmul.f32 %v1520_v24, %v88_v61  ;;  %vm1438_vm15 = vcmp.lt.s32.totalorder %v1437_v40, 0  ;;  %v556_v14 = vadd.s32 %v554_v43, %v548_v22  ;;  %v442_v30 = vsel %vm440_vm12, %v441_v16, %v1858_v54 }
  0x73   :  { %v558_v12 = vsel %vm557_vm13, 1, %v2895_v34  ;;  %v578_v32 = vadd.s32 %v576_v3, %v570_v48  ;;  %v651_v45 = vshrl.u32 %v650_v53, 23  ;;  %v106_v23 = vmul.f32 %v1520_v24, %v89_v56 }
  0x74   :  { %v122_v21 = vadd.f32 0.5, %v1837_v57  ;;  %v153_v33 = vsub.f32 %v1817_v4, %v145_v36  ;;  %v580_v15 = vsel %vm579_vm14, 1, %v2895_v34  ;;  %v1892_v25 = vmul.f32 %v1520_v24, %v90_v60 }
  0x75   :  { %v113_v50 = vadd.f32 %v1522_v29, %v104_v42  ;;  %v123_v5 = vadd.f32 0.5, %v1839_v20  ;;  %v1445_v55 = vadd.s32 4294967169, %v651_v45  ;;  %v291_v49 = vsel %vm1438_vm15, 0, %v1437_v40 }
  0x76   :  { %v443_v18 = vclz %v442_v30  ;;  %v550_v0 = vshrl.u32 %v1833_v19, 16  ;;  %v560_v1 = vadd.s32 %v558_v12, %v556_v14  ;;  %v1898_v61 = vadd.f32 %v1522_v29, %v105_v9 }
  0x77   :  { %v572_v4 = vshrl.u32 %v1846_v7, 16  ;;  %v582_v22 = vadd.s32 %v580_v15, %v578_v32  ;;  %v657_v56 = vadd.s32 1, %v1445_v55  ;;  %v1902_v24 = vadd.f32 %v1522_v29, %v106_v23 }
  0x78   :  { %v124_v16 = vadd.f32 0.5, %v1841_v17  ;;  %v1905_v43 = vmul.f32 0.125, %v122_v21  ;;  %v170_v40 = vmul.f32 %v1528_v41, %v153_v33  ;;  %v1908_v48 = vmul.f32 0.125, %v123_v5 }
  0x79   :  { %v296_v19 = vsub.s32 4294967266, %v291_v49  ;;  %v508_v36 = vshrl.u32 %v2892_v6, %v1726_v63  ;;  %vm658_vm0 = vcmp.gt.s32.totalorder %v657_v56, 0  ;;  %v1440_v3 = vadd.s32 4294967294, %v443_v18 }
  0x7a   :  { %v552_v7 = vshrl.u32 %v1848_v39, 16  ;;  %v561_v60 = vadd.s32 %v560_v1, %v550_v0  ;;  %v659_v42 = vsel %vm658_vm0, %v657_v56, 0  ;;  %v529_v53 = vsel %vm527_vm5, %v1777_v38, 2102212464 }
  0x7b   :  { %v574_v9 = vshrl.u32 %v1853_v26, 16  ;;  %v583_v14 = vadd.s32 %v582_v22, %v572_v4  ;;  %v2889_v30 = vand.u32 2147483647, %v1864_v37  ;;  %v1918_v12 = vmul.f32 0.125, %v124_v16 }
  0x7c   :  { %v1920_v32 = vadd.f32 %v170_v40, %v113_v50  ;;  %v276_v63 = vadd.s32 %v1698_v13, %v1694_v11  ;;  %v661_v45 = vand.u32 31, %v659_v42  ;;  %v292_v39 = vsub.s32 32, %v291_v49 }
  0x7d   :  { %v293_v23 = vshll.u32 %v1820_v58, %v291_v49  ;;  %v297_v21 = vadd.s32 127, %v296_v19  ;;  %v528_v38 = vsel %vm524_vm6, %v508_v36, %v1783_v51  ;;  %vm1441_vm1 = vcmp.lt.s32.totalorder %v1440_v3, 0 }
  0x7e   :  { %2907 = vst [vmem:[#allocation7_spill] sm:$0xff] %v1920_v32  ;;  %v530_v33 = vsel %vm526_vm7, %v1775_v35, %v529_v53  ;;  %v1931_v15 = vadd.s32 %v561_v60, %v552_v7  ;;  %v1933_v50 = vsub.s32 32, %v661_v45  ;;  %v1938_v11 = vadd.s32 %v1869_v10, %v573_v27 }
  0x7f   :  { %v584_v13 = vadd.s32 %v583_v14, %v574_v9  ;;  %v654_v58 = vand.u32 8388607, %v2889_v30  ;;  %v664_v51 = vshll.u32 %v2892_v6, %v661_v45  ;;  %v667_v35 = vshll.u32 %v2890_v8, %v661_v45 }
  0x80   :  { %v665_v5 = vshrl.u32 %v2890_v8, %v1933_v50  ;;  %v2908_v55 = vmov 2131351028   ;;  %v2909_v18 = vmov 2102212464   ;;  %v294_v26 = vshrl.u32 %v276_v63, %v292_v39 }
  0x81   :  { %v668_v49 = vshrl.u32 %v2908_v55, %v1933_v50  ;;  %v673_v0 = vshll.u32 %v2909_v18, %v661_v45  ;;  %v1949_v1 = vshrl.u32 %v659_v42, 5  ;;  %v670_v10 = vshll.u32 %v2908_v55, %v661_v45 }
  0x82   :  { %v671_v27 = vshrl.u32 %v2909_v18, %v1933_v50  ;;  %v298_v4 = vshll.u32 %v297_v21, 23  ;;  %v1955_v22 = vsel %vm1441_vm1, 0, %v1440_v3  ;;  %v531_v56 = vsel %vm525_vm8, %v528_v38, %v530_v33 }
  0x83   :  { %v2910_v16 = vmov 920167782   ;;  %vm587_vm2 = vc.u32 %v1931_v15, %v1938_v11  ;;  %v588_v19 = vadd.s32 1, %v584_v13  ;;  %v655_v36 = vor.u32 8388608, %v654_v58 }
  0x84   :  { %v674_v40 = vshrl.u32 %v2910_v16, %v1933_v50  ;;  %v1963_v7 = vor.u32 %v665_v5, %v664_v51  ;;  %v1965_v60 = vor.u32 %v668_v49, %v667_v35  ;;  %v676_v53 = vshll.u32 %v2910_v16, %v661_v45 }
  0x85   :  { %v2911_v3 = vmov 1326507024   ;;  %v138_v59 = vfloor.f32 %v1905_v43  ;;  %v295_v14 = vor.u32 %v294_v26, %v293_v23  ;;  %v1971_v63 = vor.u32 %v671_v27, %v670_v10 }
  0x86   :  { %v675_v42 = vor.u32 %v674_v40, %v673_v0  ;;  %v677_v9 = vshrl.u32 %v2911_v3, %v1933_v50  ;;  %vm679_vm3 = vcmp.lt.s32.totalorder %v1949_v1, 1  ;;  %v299_v39 = vor.u32 4788187, %v298_v4 }
  0x87   :  { %v585_v21 = vmul.u32 %v1800_v28, %v531_v56  ;;  %vm681_vm4 = vcmp.lt.s32.totalorder %v1949_v1, 3  ;;  %vm682_vm5 = vcmp.lt.s32.totalorder %v1949_v1, 4  ;;  %v451_v38 = vsub.s32 4294967266, %v1955_v22 }
  0x88   :  { %v589_v45 = vsel %vm587_vm2, %v588_v19, %v584_v13  ;;  %v1981_v33 = vshll.u32 %v655_v36, 8  ;;  %v805_v43 = vand.u32 2139095040, %v1920_v32  ;;  %v678_v23 = vor.u32 %v677_v9, %v676_v53 }
  0x89   :  { %vm680_vm6 = vcmp.lt.s32.totalorder %v1949_v1, 2  ;;  %v687_v28 = vsel %vm679_vm3, %v1963_v7, %v1965_v60  ;;  %v688_v58 = vsel %vm682_vm5, %v675_v42, 920167782  ;;  %v1993_v51 = vadd.f32 %v1522_v29, %v1892_v25 }
  0x8a   :  { %v139_v13 = vfloor.f32 %v1908_v48  ;;  %v140_v5 = vfloor.f32 %v1918_v12  ;;  %v689_v35 = vsel %vm681_vm4, %v1971_v63, %v688_v58  ;;  %v2000_v49 = vmul.f32 8.0, %v138_v59 }
  0x8b   :  { %v302_v0 = vcvt.s32.f32 %v295_v14  ;;  %v431_v26 = vadd.s32 %v1740_v2, %v1738_v44  ;;  %v590_v10 = vadd.s32 %v589_v45, %v585_v21  ;;  %v300_v27 = vand.u32 2147483647, %v299_v39 }
  0x8c   :  { %v447_v4 = vsub.s32 32, %v1955_v22  ;;  %v690_v29 = vsel %vm680_vm6, %v687_v28, %v689_v35  ;;  %v691_v25 = vsel %vm679_vm3, %v1965_v60, %v1971_v63  ;;  %v452_v48 = vadd.s32 127, %v451_v38 }
  0x8d   :  { %v692_v12 = vsel %vm682_vm5, %v678_v23, 1326507024  ;;  %v696_v56 = vand.u32 65535, %v1981_v33  ;;  %v806_v40 = vshrl.u32 %v805_v43, 23  ;;  %v697_v2 = vshrl.u32 %v1981_v33, 16 }
  0x8e   :  { %v693_v44 = vsel %vm681_vm4, %v675_v42, %v692_v12  ;;  %v720_v19 = vand.u32 65535, %v690_v29  ;;  %v721_v36 = vshrl.u32 %v690_v29, 16  ;;  %v2017_v53 = vmul.f32 8.0, %v139_v13 }
  0x8f   :  { %v2019_v9 = vmul.f32 8.0, %v140_v5  ;;  %v591_v59 = vadd.s32 536870912, %v590_v10  ;;  %v694_v14 = vsel %vm680_vm6, %v691_v25, %v693_v44  ;;  %v303_v39 = vmul.f32 %v302_v0, %v300_v27 }
  0x90   :  { %v448_v21 = vshll.u32 %v1858_v54, %v1955_v22  ;;  %v449_v38 = vshrl.u32 %v431_v26, %v447_v4  ;;  %v698_v45 = vand.u32 65535, %v694_v14  ;;  %vm184_vm7 = vcmp.lt.s32.totalorder %v1532_v46, 0 }
  0x91   :  { %v453_v42 = vshll.u32 %v452_v48, 23  ;;  %v699_v43 = vshrl.u32 %v694_v14, 16  ;;  %v1448_v23 = vadd.s32 4294967169, %v806_v40  ;;  %v722_v58 = vmul.u32 %v720_v19, %v696_v56 }
  0x92   :  { %v2026_v28 = vmul.u32 %v698_v45, %v697_v2  ;;  %v723_v13 = vmul.u32 %v721_v36, %v696_v56  ;;  %v2028_v5 = vmul.u32 %v720_v19, %v697_v2  ;;  %v2912_v35 = vand.u32 2147483647, %v1532_v46 }
  0x93   :  { %v2036_v54 = vshrl.u32 %v591_v59, 30  ;;  %v700_v22 = vmul.u32 %v698_v45, %v696_v56  ;;  %v701_v26 = vmul.u32 %v699_v43, %v696_v56  ;;  %v304_v27 = vxor.u32 2147483648, %v303_v39 }
  0x94   :  { %vm2032_vm8 = vcmp.le.f32.partialorder %v2912_v35, 0.7853982  ;;  %v450_v4 = vor.u32 %v449_v38, %v448_v21  ;;  %v725_v29 = vmul.u32 %v721_v36, %v697_v2  ;;  %v726_v25 = vshll.u32 %v723_v13, 16 }
  0x95   :  { %v454_v48 = vor.u32 4788187, %v453_v42  ;;  %v704_v12 = vshll.u32 %v701_v26, 16  ;;  %v706_v40 = vshll.u32 %v2026_v28, 16  ;;  %v812_v44 = vadd.s32 1, %v1448_v23 }
  0x96   :  { %v703_v19 = vmul.u32 %v699_v43, %v697_v2  ;;  %v728_v14 = vshll.u32 %v2028_v5, 16  ;;  %vm730_vm9 = vc.u32 %v722_v58, %v726_v25  ;;  %v2894_v35 = vand.u32 2147483647, %v1920_v32 }
  0x97   :  { %v593_v59 = vshll.u32 %v2036_v54, 30  ;;  %vm708_vm10 = vc.u32 %v700_v22, %v704_v12  ;;  %v710_v45 = vadd.s32 %v704_v12, %v700_v22  ;;  %v731_v56 = vsel %vm730_vm9, 1, %v2895_v34 }
  0x98   :  { %v306_v36 = vsub.s32 4, %v1772_v31  ;;  %v709_v21 = vsel %vm708_vm10, 1, %v2895_v34  ;;  %v732_v38 = vadd.s32 %v726_v25, %v722_v58  ;;  %v733_v42 = vadd.s32 %v731_v56, %v725_v29 }
  0x99   :  { %v305_v2 = vsel %vm184_vm7, %v304_v27, %v303_v39  ;;  %v457_v43 = vcvt.s32.f32 %v450_v4  ;;  %vm712_vm11 = vc.u32 %v710_v45, %v706_v40  ;;  %vm813_vm12 = vcmp.gt.s32.totalorder %v812_v44, 0 }
  0x9a   :  { %v455_v23 = vand.u32 2147483647, %v454_v48  ;;  %v711_v30 = vadd.s32 %v709_v21, %v703_v19  ;;  %vm734_vm13 = vc.u32 %v732_v38, %v728_v14  ;;  %v814_v8 = vsel %vm813_vm12, %v812_v44, 0 }
  0x9b   :  { %v2047_v6 = vsub.s32 %v590_v10, %v593_v59  ;;  %v713_v22 = vsel %vm712_vm11, 1, %v2895_v34  ;;  %v735_v12 = vsel %vm734_vm13, 1, %v2895_v34  ;;  %v809_v58 = vand.u32 8388607, %v2894_v35 }
  0x9c   :  { %v154_v29 = vsub.f32 %v1837_v57, %v2000_v49  ;;  %v727_v39 = vshrl.u32 %v723_v13, 16  ;;  %v737_v27 = vadd.s32 %v735_v12, %v733_v42  ;;  %v816_v4 = vand.u32 31, %v814_v8 }
  0x9d   :  { %v155_v25 = vsub.f32 %v1839_v20, %v2017_v53  ;;  %v2062_v48 = vsel %vm184_vm7, %v306_v36, %v1772_v31  ;;  %v2067_v40 = vsel %vm2032_vm8, %v1532_v46, %v305_v2  ;;  %v2069_v57 = vmul.f32 %v457_v43, %v455_v23 }
  0x9e   :  { %v705_v49 = vshrl.u32 %v701_v26, 16  ;;  %v715_v13 = vadd.s32 %v713_v22, %v711_v30  ;;  %v2071_v44 = vsub.s32 32, %v816_v4  ;;  %vm595_vm14 = vcmp.lt.s32.totalorder %v2047_v6, 0 }
  0x9f   :  { %v596_v19 = vsub.s32 0, %v2047_v6  ;;  %v2915_v59 = vmov 683565275   ;;  %v810_v31 = vor.u32 8388608, %v809_v58  ;;  %v684_v56 = vsel %vm682_vm5, %v1971_v63, 2102212464 }
  0xa0   :  { %v663_v45 = vshrl.u32 %v2915_v59, %v1933_v50  ;;  %v729_v36 = vshrl.u32 %v2028_v5, 16  ;;  %v738_v21 = vadd.s32 %v737_v27, %v727_v39  ;;  %v2081_v42 = vshrl.u32 %v814_v8, 5 }
  0xa1   :  { %v819_v30 = vshll.u32 %v2915_v59, %v816_v4  ;;  %v2916_v26 = vmov 2475754826   ;;  %v823_v50 = vshrl.u32 %v2908_v55, %v2071_v44  ;;  %v707_v23 = vshrl.u32 %v2026_v28, 16 }
  0xa2   :  { %v820_v2 = vshrl.u32 %v2916_v26, %v2071_v44  ;;  %v822_v43 = vshll.u32 %v2916_v26, %v816_v4  ;;  %v716_v22 = vadd.s32 %v715_v13, %v705_v49  ;;  %v825_v63 = vshll.u32 %v2908_v55, %v816_v4 }
  0xa3   :  { %v826_v5 = vshrl.u32 %v2909_v18, %v2071_v44  ;;  %v597_v8 = vsel %vm595_vm14, %v596_v19, %v2047_v6  ;;  %v683_v12 = vsel %vm679_vm3, %v663_v45, %v1963_v7  ;;  %v828_v58 = vshll.u32 %v2909_v18, %v816_v4 }
  0xa4   :  { %v829_v39 = vshrl.u32 %v2910_v16, %v2071_v44  ;;  %v685_v28 = vsel %vm681_vm4, %v1965_v60, %v684_v56  ;;  %v2105_v27 = vadd.s32 %v732_v38, %v728_v14  ;;  %v831_v49 = vshll.u32 %v2910_v16, %v816_v4 }
  0xa5   :  { %v832_v13 = vshrl.u32 %v2911_v3, %v2071_v44  ;;  %v739_v19 = vadd.s32 %v738_v21, %v729_v36  ;;  %v2110_v35 = vor.u32 %v820_v2, %v819_v30  ;;  %v2112_v7 = vor.u32 %v823_v50, %v822_v43 }
  0xa6   :  { %vm834_vm15 = vcmp.lt.s32.totalorder %v2081_v42, 1  ;;  %v2115_v45 = vadd.s32 %v716_v22, %v707_v23  ;;  %v2117_v34 = vor.u32 %v826_v5, %v825_v63  ;;  %v830_v10 = vor.u32 %v829_v39, %v828_v58 }
  0xa7   :  { %v833_v60 = vor.u32 %v832_v13, %v831_v49  ;;  %v171_v14 = vmul.f32 %v1528_v41, %v154_v29  ;;  %v598_v38 = vclz %v597_v8  ;;  %vm836_vm0 = vcmp.lt.s32.totalorder %v2081_v42, 3 }
  0xa8   :  { %vm837_vm1 = vcmp.lt.s32.totalorder %v2081_v42, 4  ;;  %v309_v4 = vsel %vm2032_vm8, 0, %v2062_v48  ;;  %v2127_v56 = vmul.f32 %v2067_v40, %v2067_v40  ;;  %v459_v36 = vxor.u32 2147483648, %v2069_v57 }
  0xa9   :  { %v843_v21 = vsel %vm837_vm1, %v830_v10, 920167782  ;;  %v686_v29 = vsel %vm680_vm6, %v683_v12, %v685_v28  ;;  %v743_v30 = vadd.s32 1, %v739_v19  ;;  %vm835_vm2 = vcmp.lt.s32.totalorder %v2081_v42, 2 }
  0xaa   :  { %v842_v0 = vsel %vm834_vm15, %v2110_v35, %v2112_v7  ;;  %vm742_vm3 = vc.u32 %v2115_v45, %v2105_v27  ;;  %v844_v48 = vsel %vm836_vm0, %v2117_v34, %v843_v21  ;;  %v847_v2 = vsel %vm837_vm1, %v833_v60, 1326507024 }
  0xab   :  { %v2146_v1 = vshll.u32 %v810_v31, 8  ;;  %v311_v43 = vmul.f32 -0.001358992, %v2127_v56  ;;  %vm339_vm4 = vcmp.lt.s32.totalorder %v1534_v47, 0  ;;  %v1443_v50 = vadd.s32 4294967294, %v598_v38 }
  0xac   :  { %v846_v23 = vsel %vm834_vm15, %v2112_v7, %v2117_v34  ;;  %v318_v22 = vmul.f32 -0.00019511016, %v2127_v56  ;;  %v740_v63 = vmul.u32 %v1981_v33, %v686_v29  ;;  %v845_v5 = vsel %vm835_vm2, %v842_v0, %v844_v48 }
  0xad   :  { %v848_v31 = vsel %vm836_vm0, %v830_v10, %v847_v2  ;;  %v2164_v8 = vmul.f32 %v1528_v41, %v155_v25  ;;  %v326_v12 = vadd.s32 3, %v309_v4  ;;  %v2917_v58 = vand.u32 2147483647, %v1534_v47 }
  0xae   :  { %v744_v33 = vsel %vm742_vm3, %v743_v30, %v739_v19  ;;  %v460_v28 = vsel %vm339_vm4, %v459_v36, %v2069_v57  ;;  %v849_v10 = vsel %vm835_vm2, %v846_v23, %v848_v31  ;;  %v851_v20 = vand.u32 65535, %v2146_v1 }
  0xaf   :  { %vm2168_vm5 = vcmp.le.f32.partialorder %v2917_v58, 0.7853982  ;;  %v876_v53 = vshrl.u32 %v845_v5, 16  ;;  %v312_v25 = vadd.f32 0.041655596, %v311_v43  ;;  %v461_v49 = vsub.s32 4, %v1829_v52 }
  0xb0   :  { %vm1444_vm6 = vcmp.lt.s32.totalorder %v1443_v50, 0  ;;  %v852_v13 = vshrl.u32 %v2146_v1, 16  ;;  %v319_v60 = vadd.f32 0.008332121, %v318_v22  ;;  %v2180_v38 = vadd.s32 %v744_v33, %v740_v63 }
  0xb1   :  { %v853_v19 = vand.u32 65535, %v849_v10  ;;  %v854_v4 = vshrl.u32 %v849_v10, 16  ;;  %v2920_v57 = vsub.f32 %v1841_v17, %v2019_v9  ;;  %v2189_v21 = vadd.f32 %v171_v14, %v1898_v61 }
  0xb2   :  { %v2194_v29 = vsel %vm2168_vm5, %v1534_v47, %v460_v28  ;;  %v875_v30 = vand.u32 65535, %v845_v5  ;;  %v2196_v0 = vsel %vm1444_vm6, 0, %v1443_v50  ;;  %v878_v43 = vmul.u32 %v876_v53, %v851_v20 }
  0xb3   :  { %v2186_v36 = vmul.f32 %v1528_v41, %v2920_v57  ;;  %v855_v48 = vmul.u32 %v853_v19, %v851_v20  ;;  %v856_v2 = vmul.u32 %v854_v4, %v851_v20  ;;  %v313_v23 = vmul.f32 %v312_v25, %v2127_v56 }
  0xb4   :  { %v2199_v17 = vand.u32 3, %v326_v12  ;;  %v2204_v41 = vsel %vm339_vm4, %v461_v49, %v1829_v52  ;;  %v857_v61 = vmul.u32 %v853_v19, %v852_v13  ;;  %v320_v9 = vmul.f32 %v319_v60, %v2127_v56 }
  0xb5   :  { %v746_v14 = vadd.s32 536870912, %v2180_v38  ;;  %v858_v22 = vmul.u32 %v854_v4, %v852_v13  ;;  %v859_v50 = vshll.u32 %v856_v2, 16  ;;  %v2210_v63 = vmul.f32 %v2194_v29, %v2194_v29 }
  0xb6   :  { %v606_v5 = vsub.s32 4294967266, %v2196_v0  ;;  %v861_v31 = vshll.u32 %v857_v61, 16  ;;  %v879_v12 = vmul.u32 %v875_v30, %v852_v13  ;;  %v877_v33 = vmul.u32 %v875_v30, %v851_v20 }
  0xb7   :  { %vm863_vm7 = vc.u32 %v855_v48, %v859_v50  ;;  %v865_v58 = vadd.s32 %v859_v50, %v855_v48  ;;  %v881_v52 = vshll.u32 %v878_v43, 16  ;;  %v314_v28 = vadd.f32 -0.4999988, %v313_v23 }
  0xb8   :  { %v586_v10 = vadd.s32 %v1938_v11, %v1931_v15  ;;  %v602_v25 = vsub.s32 32, %v2196_v0  ;;  %v2921_v49 = vmov 0   ;;  %v321_v19 = vadd.f32 -0.16666654, %v320_v9 }
  0xb9   :  { %v864_v60 = vsel %vm863_vm7, 1, %v2921_v49  ;;  %v2217_v4 = vshrl.u32 %v746_v14, 30  ;;  %v880_v32 = vmul.u32 %v876_v53, %v852_v13  ;;  %v473_v37 = vmul.f32 -0.00019511016, %v2210_v63 }
  0xba   :  { %v866_v57 = vadd.s32 %v864_v60, %v858_v22  ;;  %v860_v47 = vshrl.u32 %v856_v2, 16  ;;  %vm867_vm8 = vc.u32 %v865_v58, %v861_v31  ;;  %v883_v48 = vshll.u32 %v879_v12, 16 }
  0xbb   :  { %v603_v20 = vshll.u32 %v2047_v6, %v2196_v0  ;;  %v607_v30 = vadd.s32 127, %v606_v5  ;;  %v868_v15 = vsel %vm867_vm8, 1, %v2921_v49  ;;  %vm885_vm9 = vc.u32 %v877_v33, %v881_v52 }
  0xbc   :  { %v604_v11 = vshrl.u32 %v586_v10, %v602_v25  ;;  %v870_v23 = vadd.s32 %v868_v15, %v866_v57  ;;  %v886_v9 = vsel %vm885_vm9, 1, %v2921_v49  ;;  %v887_v14 = vadd.s32 %v881_v52, %v877_v33 }
  0xbd   :  { %v748_v22 = vshll.u32 %v2217_v4, 30  ;;  %v818_v53 = vshrl.u32 %v2915_v59, %v2071_v44  ;;  %v888_v13 = vadd.s32 %v886_v9, %v880_v32  ;;  %v960_v2 = vand.u32 2139095040, %v2189_v21 }
  0xbe   :  { %v862_v50 = vshrl.u32 %v857_v61, 16  ;;  %v871_v31 = vadd.s32 %v870_v23, %v860_v47  ;;  %v882_v6 = vshrl.u32 %v878_v43, 16  ;;  %vm889_vm10 = vc.u32 %v887_v14, %v883_v48 }
  0xbf   :  { %v608_v0 = vshll.u32 %v607_v30, 23  ;;  %v839_v5 = vsel %vm837_vm1, %v2117_v34, 2102212464  ;;  %v890_v58 = vsel %vm889_vm10, 1, %v2921_v49  ;;  %v961_v33 = vshrl.u32 %v960_v2, 23 }
  0xc0   :  { %v315_v52 = vmul.f32 %v314_v28, %v2127_v56  ;;  %v322_v10 = vmul.f32 %v321_v19, %v2127_v56  ;;  %v884_v44 = vshrl.u32 %v879_v12, 16  ;;  %v892_v32 = vadd.s32 %v890_v58, %v888_v13 }
  0xc1   :  { %v466_v25 = vmul.f32 -0.001358992, %v2210_v63  ;;  %v2236_v47 = vsub.s32 %v2180_v38, %v748_v22  ;;  %v838_v43 = vsel %vm834_vm15, %v818_v53, %v2110_v35  ;;  %v1451_v61 = vadd.s32 4294967169, %v961_v33 }
  0xc2   :  { %v840_v34 = vsel %vm836_vm0, %v2112_v7, %v839_v5  ;;  %v2244_v60 = vadd.s32 %v871_v31, %v862_v50  ;;  %v2246_v28 = vadd.s32 %v887_v14, %v883_v48  ;;  %v893_v56 = vadd.s32 %v892_v32, %v882_v6 }
  0xc3   :  { %v474_v12 = vadd.f32 0.008332121, %v473_v37  ;;  %v605_v19 = vor.u32 %v604_v11, %v603_v20  ;;  %v609_v57 = vor.u32 4788187, %v608_v0  ;;  %v967_v30 = vadd.s32 1, %v1451_v61 }
  0xc4   :  { %v2248_v38 = vadd.f32 1.0, %v315_v52  ;;  %v323_v15 = vadd.f32 1.0, %v322_v10  ;;  %v464_v35 = vsel %vm2168_vm5, 0, %v2204_v41  ;;  %v894_v23 = vadd.s32 %v893_v56, %v884_v44 }
  0xc5   :  { %v467_v9 = vadd.f32 0.041655596, %v466_v25  ;;  %v751_v7 = vsub.s32 0, %v2236_v47  ;;  %v841_v48 = vsel %vm835_vm2, %v838_v43, %v840_v34  ;;  %vm968_vm11 = vcmp.gt.s32.totalorder %v967_v30, 0 }
  0xc6   :  { %vm750_vm12 = vcmp.lt.s32.totalorder %v2236_v47, 0  ;;  %vm897_vm13 = vc.u32 %v2244_v60, %v2246_v28  ;;  %v898_v37 = vadd.s32 1, %v894_v23  ;;  %v969_v20 = vsel %vm968_vm11, %v967_v30, 0 }
  0xc7   :  { %v475_v11 = vmul.f32 %v474_v12, %v2210_v63  ;;  %v610_v14 = vand.u32 2147483647, %v609_v57  ;;  %v612_v39 = vcvt.s32.f32 %v605_v19  ;;  %v971_v41 = vand.u32 31, %v969_v20 }
  0xc8   :  { %v2262_v22 = vadd.f32 %v2164_v8, %v1902_v24  ;;  %v2266_v42 = vadd.f32 %v2186_v36, %v1993_v51  ;;  %v895_v53 = vmul.u32 %v2146_v1, %v841_v48  ;;  %vm329_vm14 = vcmp.eq.s32.totalorder %v2199_v17, 0 }
  0xc9   :  { %vm494_vm15 = vcmp.lt.s32.totalorder %v1544_v62, 0  ;;  %v752_v13 = vsel %vm750_vm12, %v751_v7, %v2236_v47  ;;  %v899_v2 = vsel %vm897_vm13, %v898_v37, %v894_v23  ;;  %v2272_v50 = vsub.s32 32, %v971_v41 }
  0xca   :  { %v324_v31 = vmul.f32 %v323_v15, %v2067_v40  ;;  %vm332_vm0 = vcmp.eq.s32.totalorder %v2199_v17, 2  ;;  %v2276_v24 = vadd.s32 3, %v464_v35  ;;  %v957_v51 = vand.u32 2147483647, %v2189_v21 }
  0xcb   :  { %v333_v8 = vxor.u32 2147483648, %v2248_v38  ;;  %v468_v1 = vmul.f32 %v467_v9, %v2210_v63  ;;  %v476_v36 = vadd.f32 -0.16666654, %v475_v11  ;;  %v613_v6 = vmul.f32 %v612_v39, %v610_v14 }
  0xcc   :  { %vm328_vm1 = vcmp.lt.s32.totalorder %v2199_v17, 2  ;;  %v753_v0 = vclz %v752_v13  ;;  %v2282_v5 = vadd.s32 %v899_v2, %v895_v53  ;;  %v974_v58 = vshll.u32 %v2915_v59, %v971_v41 }
  0xcd   :  { %v983_v40 = vshll.u32 %v2909_v18, %v971_v41  ;;  %v2922_v33 = vand.u32 2147483647, %v1544_v62  ;;  %v975_v10 = vshrl.u32 %v2916_v26, %v2272_v50  ;;  %v977_v44 = vshll.u32 %v2916_v26, %v971_v41 }
  0xce   :  { %v978_v32 = vshrl.u32 %v2908_v55, %v2272_v50  ;;  %v984_v25 = vshrl.u32 %v2910_v16, %v2272_v50  ;;  %v964_v43 = vand.u32 8388607, %v957_v51  ;;  %v2301_v61 = vshrl.u32 %v969_v20, 5 }
  0xcf   :  { %vm2288_vm2 = vcmp.le.f32.partialorder %v2922_v33, 0.7853982  ;;  %v980_v34 = vshll.u32 %v2908_v55, %v971_v41  ;;  %v981_v56 = vshrl.u32 %v2909_v18, %v2272_v50  ;;  %v330_v12 = vxor.u32 2147483648, %v324_v31 }
  0xd0   :  { %v334_v19 = vsel %vm332_vm0, %v333_v8, %v324_v31  ;;  %v469_v57 = vadd.f32 -0.4999988, %v468_v1  ;;  %v986_v30 = vshll.u32 %v2910_v16, %v971_v41  ;;  %v477_v15 = vmul.f32 %v476_v36, %v2210_v63 }
  0xd1   :  { %v614_v35 = vxor.u32 2147483648, %v613_v6  ;;  %v985_v23 = vor.u32 %v984_v25, %v983_v40  ;;  %v987_v9 = vshrl.u32 %v2911_v3, %v2272_v50  ;;  %vm325_vm3 = vweird.f32 %v1532_v46 }
  0xd2   :  { %v1446_v7 = vadd.s32 4294967294, %v753_v0  ;;  %v901_v48 = vadd.s32 536870912, %v2282_v5  ;;  %v2314_v37 = vor.u32 %v975_v10, %v974_v58  ;;  %v2316_v20 = vor.u32 %v978_v32, %v977_v44 }
  0xd3   :  { %v965_v11 = vor.u32 8388608, %v964_v43  ;;  %v2318_v14 = vor.u32 %v981_v56, %v980_v34  ;;  %vm989_vm4 = vcmp.lt.s32.totalorder %v2301_v61, 1  ;;  %vm992_vm5 = vcmp.lt.s32.totalorder %v2301_v61, 4 }
  0xd4   :  { %v470_v39 = vmul.f32 %v469_v57, %v2210_v63  ;;  %v616_v41 = vsub.s32 4, %v2036_v54  ;;  %v988_v53 = vor.u32 %v987_v9, %v986_v30  ;;  %vm991_vm6 = vcmp.lt.s32.totalorder %v2301_v61, 3 }
  0xd5   :  { %v331_v13 = vsel %vm329_vm14, %v2248_v38, %v330_v12  ;;  %v478_v2 = vadd.f32 1.0, %v477_v15  ;;  %v615_v31 = vsel %vm494_vm15, %v614_v35, %v613_v6  ;;  %v998_v8 = vsel %vm992_vm5, %v985_v23, 920167782 }
  0xd6   :  { %v2332_v1 = vshrl.u32 %v901_v48, 30  ;;  %vm990_vm7 = vcmp.lt.s32.totalorder %v2301_v61, 2  ;;  %v997_v63 = vsel %vm989_vm4, %v2314_v37, %v2316_v20  ;;  %v1115_v36 = vand.u32 2139095040, %v2262_v22 }
  0xd7   :  { %vm1447_vm8 = vcmp.lt.s32.totalorder %v1446_v7, 0  ;;  %v999_v38 = vsel %vm991_vm6, %v2318_v14, %v998_v8  ;;  %v1001_v6 = vsel %vm989_vm4, %v2316_v20, %v2318_v14  ;;  %v2347_v0 = vshll.u32 %v965_v11, 8 }
  0xd8   :  { %v335_v58 = vsel %vm328_vm1, %v331_v13, %v334_v19  ;;  %v2351_v40 = vadd.f32 1.0, %v470_v39  ;;  %v2356_v33 = vsel %vm494_vm15, %v616_v41, %v2036_v54  ;;  %v1002_v10 = vsel %vm992_vm5, %v988_v53, 1326507024 }
  0xd9   :  { %v2361_v44 = vmul.f32 %v478_v2, %v2194_v29  ;;  %v2366_v32 = vsel %vm2288_vm2, %v1544_v62, %v615_v31  ;;  %v1000_v17 = vsel %vm990_vm7, %v997_v63, %v999_v38  ;;  %v1003_v25 = vsel %vm991_vm6, %v985_v23, %v1002_v10 }
  0xda   :  { %v2372_v43 = vsel %vm1447_vm8, 0, %v1446_v7  ;;  %v903_v54 = vshll.u32 %v2332_v1, 30  ;;  %v1004_v34 = vsel %vm990_vm7, %v1001_v6, %v1003_v25  ;;  %v1116_v29 = vshrl.u32 %v1115_v36, 23 }
  0xdb   :  { %v2378_v56 = vand.u32 3, %v2276_v24  ;;  %v1006_v12 = vand.u32 65535, %v2347_v0  ;;  %v1008_v19 = vand.u32 65535, %v1004_v34  ;;  %v1009_v57 = vshrl.u32 %v1004_v34, 16 }
  0xdc   :  { %v2383_v30 = vmul.f32 %v2366_v32, %v2366_v32  ;;  %v1007_v15 = vshrl.u32 %v2347_v0, 16  ;;  %v1030_v35 = vand.u32 65535, %v1000_v17  ;;  %v1031_v23 = vshrl.u32 %v1000_v17, 16 }
  0xdd   :  { %v2388_v9 = vsel %vm325_vm3, nan, %v335_v58  ;;  %v488_v7 = vxor.u32 2147483648, %v2351_v40  ;;  %v619_v24 = vsel %vm2288_vm2, 0, %v2356_v33  ;;  %v761_v48 = vsub.s32 4294967266, %v2372_v43 }
  0xde   :  { %v485_v11 = vxor.u32 2147483648, %v2361_v44  ;;  %v621_v39 = vmul.f32 -0.001358992, %v2383_v30  ;;  %v2398_v41 = vsub.s32 %v2282_v5, %v903_v54  ;;  %v1454_v53 = vadd.s32 4294967169, %v1116_v29 }
  0xdf   :  { %vm487_vm9 = vcmp.eq.s32.totalorder %v2378_v56, 2  ;;  %v741_v46 = vadd.s32 %v2105_v27, %v2115_v45  ;;  %v757_v13 = vsub.s32 32, %v2372_v43  ;;  %v1010_v2 = vmul.u32 %v1008_v19, %v1006_v12 }
  0xe0   :  { %v1011_v31 = vmul.u32 %v1009_v57, %v1006_v12  ;;  %v973_v8 = vshrl.u32 %v2915_v59, %v2272_v50  ;;  %v1012_v63 = vmul.u32 %v1008_v19, %v1007_v15  ;;  %v1033_v36 = vmul.u32 %v1031_v23, %v1006_v12 }
  0xe1   :  { %v1034_v38 = vmul.u32 %v1030_v35, %v1007_v15  ;;  %v2406_v6 = vadd.s32 127, %v761_v48  ;;  %v1013_v5 = vmul.u32 %v1009_v57, %v1007_v15  ;;  %v1032_v10 = vmul.u32 %v1030_v35, %v1006_v12 }
  0xe2   :  { %v1014_v58 = vshll.u32 %v1011_v31, 16  ;;  %v906_v17 = vsub.s32 0, %v2398_v41  ;;  %v1016_v25 = vshll.u32 %v1012_v63, 16  ;;  %v1036_v54 = vshll.u32 %v1033_v36, 16 }
  0xe3   :  { %v1122_v27 = vadd.s32 1, %v1454_v53  ;;  %vm905_vm10 = vcmp.lt.s32.totalorder %v2398_v41, 0  ;;  %v1035_v34 = vmul.u32 %v1031_v23, %v1007_v15  ;;  %v993_v50 = vsel %vm989_vm4, %v973_v8, %v2314_v37 }
  0xe4   :  { %vm1018_vm11 = vc.u32 %v1010_v2, %v1014_v58  ;;  %v1020_v45 = vadd.s32 %v1014_v58, %v1010_v2  ;;  %v994_v29 = vsel %vm992_vm5, %v2318_v14, 2102212464  ;;  %v1038_v19 = vshll.u32 %v1034_v38, 16 }
  0xe5   :  { %v1019_v12 = vsel %vm1018_vm11, 1, %v2921_v49  ;;  %v1015_v57 = vshrl.u32 %v1011_v31, 16  ;;  %vm1040_vm13 = vc.u32 %v1032_v10, %v1036_v54  ;;  %v907_v48 = vsel %vm905_vm10, %v906_v17, %v2398_v41 }
  0xe6   :  { %v1021_v35 = vadd.s32 %v1019_v12, %v1013_v5  ;;  %vm1022_vm12 = vc.u32 %v1020_v45, %v1016_v25  ;;  %v1041_v15 = vsel %vm1040_vm13, 1, %v2921_v49  ;;  %v1042_v23 = vadd.s32 %v1036_v54, %v1032_v10 }
  0xe7   :  { %v1023_v53 = vsel %vm1022_vm12, 1, %v2921_v49  ;;  %v1017_v2 = vshrl.u32 %v1012_v63, 16  ;;  %v1043_v8 = vadd.s32 %v1041_v15, %v1035_v34  ;;  %vm1123_vm14 = vcmp.gt.s32.totalorder %v1122_v27, 0 }
  0xe8   :  { %v1025_v37 = vadd.s32 %v1023_v53, %v1021_v35  ;;  %v995_v14 = vsel %vm991_vm6, %v2316_v20, %v994_v29  ;;  %v1037_v58 = vshrl.u32 %v1033_v36, 16  ;;  %vm1044_vm15 = vc.u32 %v1042_v23, %v1038_v19 }
  0xe9   :  { %v1124_v31 = vsel %vm1123_vm14, %v1122_v27, 0  ;;  %v908_v5 = vclz %v907_v48  ;;  %v1045_v17 = vsel %vm1044_vm15, 1, %v2921_v49  ;;  %v2904_v45 = vand.u32 2147483647, %v2262_v22 }
  0xea   :  { %v1026_v25 = vadd.s32 %v1025_v37, %v1015_v57  ;;  %vm484_vm0 = vcmp.eq.s32.totalorder %v2378_v56, 0  ;;  %v489_v63 = vsel %vm487_vm9, %v488_v7, %v2361_v44  ;;  %v1039_v10 = vshrl.u32 %v1034_v38, 16 }
  0xeb   :  { %v1047_v54 = vadd.s32 %v1045_v17, %v1043_v8  ;;  %v1126_v34 = vand.u32 31, %v1124_v31  ;;  %v628_v20 = vmul.f32 -0.00019511016, %v2383_v30  ;;  %v996_v36 = vsel %vm990_vm7, %v993_v50, %v995_v14 }
  0xec   :  { %v2432_v27 = vadd.s32 %v1026_v25, %v1017_v2  ;;  %v2434_v29 = vadd.s32 %v1042_v23, %v1038_v19  ;;  %v622_v12 = vadd.f32 0.041655596, %v621_v39  ;;  %v758_v57 = vshll.u32 %v2236_v47, %v2372_v43  ;;  %v2925_v25 = vld [vmem:[#allocation5_spill] sm:$0xff] }
  0xed   :  { %v1048_v35 = vadd.s32 %v1047_v54, %v1037_v58  ;;  %v2438_v48 = vsub.s32 32, %v1126_v34  ;;  %vm483_vm1 = vcmp.lt.s32.totalorder %v2378_v56, 2  ;;  %v759_v7 = vshrl.u32 %v741_v46, %v757_v13 }
  0xee   :  { %v763_v38 = vshll.u32 %v2406_v6, 23  ;;  %v1449_v53 = vadd.s32 4294967294, %v908_v5  ;;  %v1119_v61 = vand.u32 8388607, %v2904_v45  ;;  %v1050_v19 = vmul.u32 %v2347_v0, %v996_v36 }
  0xef   :  { %v1049_v50 = vadd.s32 %v1048_v35, %v1039_v10  ;;  %v2445_v15 = vshrl.u32 %v1124_v31, 5  ;;  %v1129_v39 = vshll.u32 %v2915_v59, %v1126_v34  ;;  %vm1052_vm3 = vc.u32 %v2432_v27, %v2434_v29 }
  0xf0   :  { %v1130_v47 = vshrl.u32 %v2916_v26, %v2438_v48  ;;  %v1132_v43 = vshll.u32 %v2916_v26, %v1126_v34  ;;  %v1133_v46 = vshrl.u32 %v2908_v55, %v2438_v48  ;;  %v1135_v6 = vshll.u32 %v2908_v55, %v1126_v34 }
  0xf1   :  { %v1053_v13 = vadd.s32 1, %v1049_v50  ;;  %v1136_v0 = vshrl.u32 %v2909_v18, %v2438_v48  ;;  %v1138_v23 = vshll.u32 %v2909_v18, %v1126_v34  ;;  %v760_v2 = vor.u32 %v759_v7, %v758_v57 }
  0xf2   :  { %v764_v37 = vor.u32 4788187, %v763_v38  ;;  %v1120_v8 = vor.u32 8388608, %v1119_v61  ;;  %v1139_v14 = vshrl.u32 %v2910_v16, %v2438_v48  ;;  %vm1450_vm4 = vcmp.lt.s32.totalorder %v1449_v53, 0 }
  0xf3   :  { %v1054_v58 = vsel %vm1052_vm3, %v1053_v13, %v1049_v50  ;;  %v1141_v31 = vshll.u32 %v2910_v16, %v1126_v34  ;;  %v1142_v5 = vshrl.u32 %v2911_v3, %v2438_v48  ;;  %vm480_vm5 = vweird.f32 %v2925_v25 }
  0xf4   :  { %v1055_v17 = vadd.s32 %v1054_v58, %v1050_v19  ;;  %v2465_v10 = vor.u32 %v1130_v47, %v1129_v39  ;;  %v2467_v54 = vor.u32 %v1133_v46, %v1132_v43  ;;  %vm1144_vm6 = vcmp.lt.s32.totalorder %v2445_v15, 1 }
  0xf5   :  { %v2470_v36 = vor.u32 %v1136_v0, %v1135_v6  ;;  %v1140_v57 = vor.u32 %v1139_v14, %v1138_v23  ;;  %v1143_v35 = vor.u32 %v1142_v5, %v1141_v31  ;;  %vm1147_vm7 = vcmp.lt.s32.totalorder %v2445_v15, 4 }
  0xf6   :  { %v486_v34 = vsel %vm484_vm0, %v2351_v40, %v485_v11  ;;  %v629_v7 = vadd.f32 0.008332121, %v628_v20  ;;  %v1056_v38 = vadd.s32 536870912, %v1055_v17  ;;  %vm1146_vm8 = vcmp.lt.s32.totalorder %v2445_v15, 3 }
  0xf7   :  { %v623_v61 = vmul.f32 %v622_v12, %v2383_v30  ;;  %v765_v50 = vand.u32 2147483647, %v764_v37  ;;  %v767_v19 = vcvt.s32.f32 %v760_v2  ;;  %v1153_v39 = vsel %vm1147_vm7, %v1140_v57, 920167782 }
  0xf8   :  { %v911_v47 = vsel %vm1450_vm4, 0, %v1449_v53  ;;  %v2483_v43 = vshrl.u32 %v1056_v38, 30  ;;  %vm1145_vm9 = vcmp.lt.s32.totalorder %v2445_v15, 2  ;;  %v1152_v40 = vsel %vm1144_vm6, %v2465_v10, %v2467_v54 }
  0xf9   :  { %v490_v44 = vsel %vm483_vm1, %v486_v34, %v489_v63  ;;  %v1154_v11 = vsel %vm1146_vm8, %v2470_v36, %v1153_v39  ;;  %v1157_v20 = vsel %vm1147_vm7, %v1143_v35, 1326507024  ;;  %v2497_v12 = vshll.u32 %v1120_v8, 8  ;;  %v2926_v63 = vld [vmem:[#allocation6_spill] sm:$0xff] }
  0xfa   :  { %v896_v53 = vadd.s32 %v2246_v28, %v2244_v60  ;;  %v912_v46 = vsub.s32 32, %v911_v47  ;;  %v1058_v13 = vshll.u32 %v2483_v43, 30  ;;  %v1156_v56 = vsel %vm1144_vm6, %v2467_v54, %v2470_v36 }
  0xfb   :  { %vm649_vm10 = vcmp.lt.s32.totalorder %v2926_v63, 0  ;;  %v916_v6 = vsub.s32 4294967266, %v911_v47  ;;  %v1155_v0 = vsel %vm1145_vm9, %v1152_v40, %v1154_v11  ;;  %v1158_v23 = vsel %vm1146_vm8, %v1140_v57, %v1157_v20 }
  0xfc   :  { %v624_v2 = vadd.f32 -0.4999988, %v623_v61  ;;  %v630_v60 = vmul.f32 %v629_v7, %v2383_v30  ;;  %v768_v28 = vmul.f32 %v767_v19, %v765_v50  ;;  %v2512_v37 = vsub.s32 %v1055_v17, %v1058_v13 }
  0xfd   :  { %v913_v8 = vshll.u32 %v2398_v41, %v911_v47  ;;  %v1159_v14 = vsel %vm1145_vm9, %v1156_v56, %v1158_v23  ;;  %v1161_v58 = vand.u32 65535, %v2497_v12  ;;  %v1186_v31 = vshrl.u32 %v1155_v0, 16 }
  0xfe   :  { %v914_v5 = vshrl.u32 %v896_v53, %v912_v46  ;;  %vm1060_vm11 = vcmp.lt.s32.totalorder %v2512_v37, 0  ;;  %v1061_v35 = vsub.s32 0, %v2512_v37  ;;  %v1162_v57 = vshrl.u32 %v2497_v12, 16 }
  0xff   :  { %v2523_v34 = vsel %vm480_vm5, nan, %v490_v44  ;;  %v917_v17 = vadd.s32 127, %v916_v6  ;;  %v1163_v7 = vand.u32 65535, %v1159_v14  ;;  %v1164_v41 = vshrl.u32 %v1159_v14, 16 }
 0x100   :  { %v631_v38 = vadd.f32 -0.16666654, %v630_v60  ;;  %v2529_v61 = vadd.s32 3, %v619_v24  ;;  %v1062_v50 = vsel %vm1060_vm11, %v1061_v35, %v2512_v37  ;;  %v1185_v19 = vand.u32 65535, %v1155_v0 }
 0x101   :  { %v1063_v39 = vclz %v1062_v50  ;;  %v1165_v47 = vmul.u32 %v1163_v7, %v1161_v58  ;;  %v1166_v40 = vmul.u32 %v1164_v41, %v1161_v58  ;;  %v1188_v11 = vmul.u32 %v1186_v31, %v1161_v58 }
 0x102   :  { %v2533_v25 = vmul.f32 %v624_v2, %v2383_v30  ;;  %v769_v44 = vxor.u32 2147483648, %v768_v28  ;;  %v915_v20 = vor.u32 %v914_v5, %v913_v8  ;;  %v1167_v53 = vmul.u32 %v1163_v7, %v1162_v57 }
 0x103   :  { %v918_v46 = vshll.u32 %v917_v17, 23  ;;  %v1452_v13 = vadd.s32 4294967294, %v1063_v39  ;;  %v1168_v52 = vmul.u32 %v1164_v41, %v1162_v57  ;;  %v1169_v56 = vshll.u32 %v1166_v40, 16 }
 0x104   :  { %v632_v33 = vmul.f32 %v631_v38, %v2383_v30  ;;  %v1171_v24 = vshll.u32 %v1167_v53, 16  ;;  %v1187_v6 = vmul.u32 %v1185_v19, %v1161_v58  ;;  %v1189_v23 = vmul.u32 %v1185_v19, %v1162_v57 }
 0x105   :  { %v2927_v0 = vand.u32 2147483647, %v2926_v63  ;;  %vm1453_vm12 = vcmp.lt.s32.totalorder %v1452_v13, 0  ;;  %vm1173_vm13 = vc.u32 %v1165_v47, %v1169_v56  ;;  %v1175_v2 = vadd.s32 %v1169_v56, %v1165_v47 }
 0x106   :  { %v1191_v8 = vshll.u32 %v1188_v11, 16  ;;  %v770_v14 = vsel %vm649_vm10, %v769_v44, %v768_v28  ;;  %v2544_v5 = vsel %vm1453_vm12, 0, %v1452_v13  ;;  %v1174_v30 = vsel %vm1173_vm13, 1, %v2921_v49 }
 0x107   :  { %vm2538_vm2 = vcmp.le.f32.partialorder %v2927_v0, 0.7853982  ;;  %v1270_v58 = vand.u32 2139095040, %v2266_v42  ;;  %v919_v35 = vor.u32 4788187, %v918_v46  ;;  %v922_v17 = vcvt.s32.f32 %v915_v20 }
 0x108   :  { %v1176_v7 = vadd.s32 %v1174_v30, %v1168_v52  ;;  %v1190_v41 = vmul.u32 %v1186_v31, %v1162_v57  ;;  %v1128_v38 = vshrl.u32 %v2915_v59, %v2438_v48  ;;  %v1170_v50 = vshrl.u32 %v1166_v40, 16 }
 0x109   :  { %vm1177_vm14 = vc.u32 %v1175_v2, %v1171_v24  ;;  %v1193_v19 = vshll.u32 %v1189_v23, 16  ;;  %v1071_v39 = vsub.s32 4294967266, %v2544_v5  ;;  %v1149_v28 = vsel %vm1147_vm7, %v2470_v36, 2102212464 }
 0x10a   :  { %v1178_v47 = vsel %vm1177_vm14, 1, %v2921_v49  ;;  %vm1195_vm15 = vc.u32 %v1187_v6, %v1191_v8  ;;  %v1197_v46 = vadd.s32 %v1191_v8, %v1187_v6  ;;  %v1271_v31 = vshrl.u32 %v1270_v58, 23 }
 0x10b   :  { %v1180_v44 = vadd.s32 %v1178_v47, %v1176_v7  ;;  %v1196_v20 = vsel %vm1195_vm15, 1, %v2921_v49  ;;  %v920_v57 = vand.u32 2147483647, %v919_v35  ;;  %v1051_v48 = vadd.s32 %v2434_v29, %v2432_v27 }
 0x10c   :  { %v1172_v40 = vshrl.u32 %v1167_v53, 16  ;;  %v1198_v13 = vadd.s32 %v1196_v20, %v1190_v41  ;;  %v1192_v56 = vshrl.u32 %v1188_v11, 16  ;;  %vm1199_vm0 = vc.u32 %v1197_v46, %v1193_v19 }
 0x10d   :  { %v1181_v52 = vadd.s32 %v1180_v44, %v1170_v50  ;;  %v1457_v24 = vadd.s32 4294967169, %v1271_v31  ;;  %v1148_v36 = vsel %vm1144_vm6, %v1128_v38, %v2465_v10  ;;  %v1150_v0 = vsel %vm1146_vm8, %v2467_v54, %v1149_v28 }
 0x10e   :  { %v1194_v6 = vshrl.u32 %v1189_v23, 16  ;;  %v1200_v2 = vsel %vm1199_vm0, 1, %v2921_v49  ;;  %v1067_v8 = vsub.s32 32, %v2544_v5  ;;  %v1072_v27 = vadd.s32 127, %v1071_v39 }
 0x10f   :  { %v1202_v29 = vadd.s32 %v1200_v2, %v1198_v13  ;;  %v1277_v53 = vadd.s32 1, %v1457_v24  ;;  %v633_v30 = vadd.f32 1.0, %v632_v33  ;;  %v771_v11 = vsub.s32 4, %v2217_v4 }
 0x110   :  { %v2567_v58 = vadd.s32 %v1181_v52, %v1172_v40  ;;  %v2569_v35 = vadd.s32 %v1197_v46, %v1193_v19  ;;  %v2574_v10 = vsel %vm2538_vm2, %v2926_v63, %v770_v14  ;;  %v1151_v54 = vsel %vm1145_vm9, %v1148_v36, %v1150_v0  ;;  %v2930_v14 = vld [vmem:[#allocation7_spill] sm:$0xff] }
 0x111   :  { %v1203_v23 = vadd.s32 %v1202_v29, %v1192_v56  ;;  %vm1278_vm1 = vcmp.gt.s32.totalorder %v1277_v53, 0  ;;  %v923_v7 = vmul.f32 %v922_v17, %v920_v57  ;;  %v1068_v33 = vshll.u32 %v2512_v37, %v2544_v5 }
 0x112   :  { %v2903_v41 = vand.u32 2147483647, %v2266_v42  ;;  %v1279_v38 = vsel %vm1278_vm1, %v1277_v53, 0  ;;  %v1069_v50 = vshrl.u32 %v1051_v48, %v1067_v8  ;;  %v1073_v19 = vshll.u32 %v1072_v27, 23 }
 0x113   :  { %v1204_v39 = vadd.s32 %v1203_v23, %v1194_v6  ;;  %v1281_v28 = vand.u32 31, %v1279_v38  ;;  %v2582_v47 = vand.u32 3, %v2529_v61  ;;  %vm804_vm3 = vcmp.lt.s32.totalorder %v2930_v14, 0 }
 0x114   :  { %v1205_v15 = vmul.u32 %v2497_v12, %v1151_v54  ;;  %vm1207_vm4 = vc.u32 %v2567_v58, %v2569_v35  ;;  %v2589_v17 = vadd.f32 1.0, %v2533_v25  ;;  %v2931_v37 = vand.u32 2147483647, %v2930_v14 }
 0x115   :  { %v1208_v44 = vadd.s32 1, %v1204_v39  ;;  %v2597_v20 = vsub.s32 32, %v1281_v28  ;;  %v2600_v61 = vmul.f32 %v633_v30, %v2366_v32  ;;  %v2605_v12 = vsel %vm649_vm10, %v771_v11, %v2217_v4 }
 0x116   :  { %vm2593_vm5 = vcmp.le.f32.partialorder %v2931_v37, 0.7853982  ;;  %v2609_v25 = vmul.f32 %v2574_v10, %v2574_v10  ;;  %v924_v46 = vxor.u32 2147483648, %v923_v7  ;;  %v1070_v31 = vor.u32 %v1069_v50, %v1068_v33 }
 0x117   :  { %v1074_v57 = vor.u32 4788187, %v1073_v19  ;;  %v1209_v48 = vsel %vm1207_vm4, %v1208_v44, %v1204_v39  ;;  %v1274_v40 = vand.u32 8388607, %v2903_v41  ;;  %v1287_v32 = vshll.u32 %v2916_v26, %v1281_v28 }
 0x118   :  { %v1210_v13 = vadd.s32 %v1209_v48, %v1205_v15  ;;  %v1290_v52 = vshll.u32 %v2908_v55, %v1281_v28  ;;  %v1293_v56 = vshll.u32 %v2909_v18, %v1281_v28  ;;  %v1288_v4 = vshrl.u32 %v2908_v55, %v2597_v20 }
 0x119   :  { %v1291_v24 = vshrl.u32 %v2909_v18, %v2597_v20  ;;  %v1294_v36 = vshrl.u32 %v2910_v16, %v2597_v20  ;;  %v1296_v0 = vshll.u32 %v2910_v16, %v1281_v28  ;;  %v776_v6 = vmul.f32 -0.001358992, %v2609_v25 }
 0x11a   :  { %v783_v2 = vmul.f32 -0.00019511016, %v2609_v25  ;;  %v1211_v8 = vadd.s32 536870912, %v1210_v13  ;;  %v2625_v27 = vshrl.u32 %v1279_v38, 5  ;;  %v1075_v29 = vand.u32 2147483647, %v1074_v57 }
 0x11b   :  { %v1077_v53 = vcvt.s32.f32 %v1070_v31  ;;  %v1275_v30 = vor.u32 8388608, %v1274_v40  ;;  %v1297_v55 = vshrl.u32 %v2911_v3, %v2597_v20  ;;  %v925_v18 = vsel %vm804_vm3, %v924_v46, %v923_v7 }
 0x11c   :  { %v2631_v11 = vshrl.u32 %v1211_v8, 30  ;;  %v1284_v16 = vshll.u32 %v2915_v59, %v1281_v28  ;;  %v1285_v54 = vshrl.u32 %v2916_v26, %v2597_v20  ;;  %v2636_v23 = vor.u32 %v1288_v4, %v1287_v32 }
 0x11d   :  { %v2638_v33 = vor.u32 %v1291_v24, %v1290_v52  ;;  %v1295_v38 = vor.u32 %v1294_v36, %v1293_v56  ;;  %v1298_v50 = vor.u32 %v1297_v55, %v1296_v0  ;;  %v784_v19 = vadd.f32 0.008332121, %v783_v2 }
 0x11e   :  { %v1213_v39 = vshll.u32 %v2631_v11, 30  ;;  %vm1299_vm6 = vcmp.lt.s32.totalorder %v2625_v27, 1  ;;  %vm1302_vm7 = vcmp.lt.s32.totalorder %v2625_v27, 4  ;;  %v2646_v3 = vsel %vm2593_vm5, %v2930_v14, %v925_v18 }
 0x11f   :  { %vm959_vm8 = vcmp.lt.s32.totalorder %v2189_v21, 0  ;;  %v1078_v26 = vmul.f32 %v1077_v53, %v1075_v29  ;;  %v2649_v7 = vshll.u32 %v1275_v30, 8  ;;  %v777_v28 = vadd.f32 0.041655596, %v776_v6 }
 0x120   :  { %v1214_v15 = vsub.s32 %v1210_v13, %v1213_v39  ;;  %v2651_v37 = vor.u32 %v1285_v54, %v1284_v16  ;;  %vm1301_vm9 = vcmp.lt.s32.totalorder %v2625_v27, 3  ;;  %vm1300_vm10 = vcmp.lt.s32.totalorder %v2625_v27, 2 }
 0x121   :  { %v1308_v44 = vsel %vm1302_vm7, %v1295_v38, 920167782  ;;  %v1311_v46 = vsel %vm1299_vm6, %v2636_v23, %v2638_v33  ;;  %v1312_v31 = vsel %vm1302_vm7, %v1298_v50, 1326507024  ;;  %v785_v57 = vmul.f32 %v784_v19, %v2609_v25 }
 0x122   :  { %v2666_v48 = vmul.f32 %v2646_v3, %v2646_v3  ;;  %vm1215_vm11 = vcmp.lt.s32.totalorder %v1214_v15, 0  ;;  %v1216_v40 = vsub.s32 0, %v1214_v15  ;;  %v1079_v13 = vxor.u32 2147483648, %v1078_v26 }
 0x123   :  { %v1313_v32 = vsel %vm1301_vm9, %v1295_v38, %v1312_v31  ;;  %v1316_v52 = vand.u32 65535, %v2649_v7  ;;  %v1317_v56 = vshrl.u32 %v2649_v7, 16  ;;  %v1307_v24 = vsel %vm1299_vm6, %v2651_v37, %v2636_v23 }
 0x124   :  { %v1217_v4 = vsel %vm1215_vm11, %v1216_v40, %v1214_v15  ;;  %v1309_v36 = vsel %vm1301_vm9, %v2638_v33, %v1308_v44  ;;  %v1314_v0 = vsel %vm1300_vm10, %v1311_v46, %v1313_v32  ;;  %v2687_v55 = vmul.f32 %v777_v28, %v2609_v25 }
 0x125   :  { %v1218_v2 = vclz %v1217_v4  ;;  %v1318_v8 = vand.u32 65535, %v1314_v0  ;;  %v1319_v29 = vshrl.u32 %v1314_v0, 16  ;;  %vm2691_vm12 = vcmp.le.f32.partialorder %v957_v51, 0.7853982 }
 0x126   :  { %v1080_v16 = vsel %vm959_vm8, %v1079_v13, %v1078_v26  ;;  %v1310_v38 = vsel %vm1300_vm10, %v1307_v24, %v1309_v36  ;;  %v2699_v19 = vadd.f32 -0.16666654, %v785_v57  ;;  %v938_v28 = vmul.f32 -0.00019511016, %v2666_v48 }
 0x127   :  { %v1455_v54 = vadd.s32 4294967294, %v1218_v2  ;;  %v1321_v50 = vmul.u32 %v1319_v29, %v1316_v52  ;;  %v2703_v44 = vmul.u32 %v1318_v8, %v1317_v56  ;;  %v1206_v51 = vadd.s32 %v2569_v35, %v2567_v58 }
 0x128   :  { %v1320_v46 = vmul.u32 %v1318_v8, %v1316_v52  ;;  %v2710_v26 = vsel %vm2691_vm12, %v2189_v21, %v1080_v16  ;;  %v1340_v57 = vand.u32 65535, %v1310_v38  ;;  %v1341_v13 = vshrl.u32 %v1310_v38, 16 }
 0x129   :  { %vm1456_vm13 = vcmp.lt.s32.totalorder %v1455_v54, 0  ;;  %v1324_v31 = vshll.u32 %v1321_v50, 16  ;;  %v1323_v36 = vmul.u32 %v1319_v29, %v1317_v56  ;;  %v931_v0 = vmul.f32 -0.001358992, %v2666_v48 }
 0x12a   :  { %v1221_v40 = vsel %vm1456_vm13, 0, %v1455_v54  ;;  %v939_v2 = vadd.f32 0.008332121, %v938_v28  ;;  %v1283_v58 = vshrl.u32 %v2915_v59, %v2597_v20  ;;  %v1326_v35 = vshll.u32 %v2703_v44, 16 }
 0x12b   :  { %v1222_v32 = vsub.s32 32, %v1221_v40  ;;  %v1223_v4 = vshll.u32 %v1214_v15, %v1221_v40  ;;  %v1226_v24 = vsub.s32 4294967266, %v1221_v40  ;;  %v2718_v8 = vmul.f32 %v2710_v26, %v2710_v26 }
 0x12c   :  { %vm1328_vm14 = vc.u32 %v1320_v46, %v1324_v31  ;;  %vm642_vm15 = vcmp.eq.s32.totalorder %v2582_v47, 2  ;;  %vm1114_vm0 = vcmp.lt.s32.totalorder %v2262_v22, 0  ;;  %v1330_v29 = vadd.s32 %v1324_v31, %v1320_v46 }
 0x12d   :  { %v1224_v16 = vshrl.u32 %v1206_v51, %v1222_v32  ;;  %v1227_v54 = vadd.s32 127, %v1226_v24  ;;  %v1329_v15 = vsel %vm1328_vm14, 1, %v2921_v49  ;;  %v1342_v38 = vmul.u32 %v1340_v57, %v1316_v52 }
 0x12e   :  { %v1343_v28 = vmul.u32 %v1341_v13, %v1316_v52  ;;  %v1331_v20 = vadd.s32 %v1329_v15, %v1323_v36  ;;  %v1344_v41 = vmul.u32 %v1340_v57, %v1317_v56  ;;  %v1325_v53 = vshrl.u32 %v1321_v50, 16 }
 0x12f   :  { %v1225_v40 = vor.u32 %v1224_v16, %v1223_v4  ;;  %v1228_v59 = vshll.u32 %v1227_v54, 23  ;;  %vm1332_vm1 = vc.u32 %v1330_v29, %v1326_v35  ;;  %v1345_v39 = vmul.u32 %v1341_v13, %v1317_v56 }
 0x130   :  { %v1346_v30 = vshll.u32 %v1343_v28, 16  ;;  %v1333_v24 = vsel %vm1332_vm1, 1, %v2921_v49  ;;  %v1348_v6 = vshll.u32 %v1344_v41, 16  ;;  %v1304_v45 = vsel %vm1302_vm7, %v2638_v33, 2102212464 }
 0x131   :  { %v1229_v51 = vor.u32 4788187, %v1228_v59  ;;  %v1232_v32 = vcvt.s32.f32 %v1225_v40  ;;  %v1335_v46 = vadd.s32 %v1333_v24, %v1331_v20  ;;  %v1093_v31 = vmul.f32 -0.00019511016, %v2718_v8 }
 0x132   :  { %vm1350_vm4 = vc.u32 %v1342_v38, %v1346_v30  ;;  %v1352_v52 = vadd.s32 %v1346_v30, %v1342_v38  ;;  %v1327_v50 = vshrl.u32 %v2703_v44, 16  ;;  %v1347_v13 = vshrl.u32 %v1343_v28, 16 }
 0x133   :  { %v1230_v4 = vand.u32 2147483647, %v1229_v51  ;;  %v1351_v56 = vsel %vm1350_vm4, 1, %v2921_v49  ;;  %v1336_v57 = vadd.s32 %v1335_v46, %v1325_v53  ;;  %vm639_vm13 = vcmp.eq.s32.totalorder %v2582_v47, 0 }
 0x134   :  { %v1353_v36 = vadd.s32 %v1351_v56, %v1345_v39  ;;  %vm1354_vm11 = vc.u32 %v1352_v52, %v1348_v6  ;;  %v1303_v33 = vsel %vm1299_vm6, %v1283_v58, %v2651_v37  ;;  %v1305_v30 = vsel %vm1301_vm9, %v2636_v23, %v1304_v45 }
 0x135   :  { %v1233_v35 = vmul.f32 %v1232_v32, %v1230_v4  ;;  %v1355_v16 = vsel %vm1354_vm11, 1, %v2921_v49  ;;  %v1086_v44 = vmul.f32 -0.001358992, %v2718_v8  ;;  %v2936_v53 = vand.u32 2147483647, %v2262_v22 }
 0x136   :  { %v1349_v54 = vshrl.u32 %v1344_v41, 16  ;;  %v1357_v15 = vadd.s32 %v1355_v16, %v1353_v36  ;;  %v1094_v29 = vadd.f32 0.008332121, %v1093_v31  ;;  %v2745_v28 = vadd.s32 %v1336_v57, %v1327_v50 }
 0x137   :  { %vm2741_vm7 = vcmp.le.f32.partialorder %v2936_v53, 0.7853982  ;;  %v1234_v38 = vxor.u32 2147483648, %v1233_v35  ;;  %v2747_v37 = vadd.s32 %v1352_v52, %v1348_v6  ;;  %v779_v45 = vadd.f32 -0.4999988, %v2687_v55 }
 0x138   :  { %v932_v23 = vadd.f32 0.041655596, %v931_v0  ;;  %v1306_v49 = vsel %vm1300_vm10, %v1303_v33, %v1305_v30  ;;  %v1358_v58 = vadd.s32 %v1357_v15, %v1347_v13  ;;  %v2939_v40 = vxor.u32 2147483648, %v2589_v17 }
 0x139   :  { %v787_v59 = vmul.f32 %v2699_v19, %v2609_v25  ;;  %v2940_v6 = vsel %vm2538_vm2, 0, %v2605_v12  ;;  %v1235_v55 = vsel %vm1114_vm0, %v1234_v38, %v1233_v35  ;;  %v940_v27 = vmul.f32 %v939_v2, %v2666_v48 }
 0x13a   :  { %v644_v41 = vsel %vm642_vm15, %v2939_v40, %v2600_v61  ;;  %v791_v20 = vadd.s32 3, %v2940_v6  ;;  %v1087_v0 = vadd.f32 0.041655596, %v1086_v44  ;;  %v2769_v51 = vsel %vm2741_vm7, %v2262_v22, %v1235_v55 }
 0x13b   :  { %v1359_v32 = vadd.s32 %v1358_v58, %v1349_v54  ;;  %v1095_v24 = vmul.f32 %v1094_v29, %v2718_v8  ;;  %v1240_v60 = vmul.f32 %v2769_v51, %v2769_v51  ;;  %v1360_v12 = vmul.u32 %v2649_v7, %v1306_v49 }
 0x13c   :  { %vm1362_vm2 = vc.u32 %v2745_v28, %v2747_v37  ;;  %v780_v19 = vmul.f32 %v779_v45, %v2609_v25  ;;  %v2941_v2 = vsub.s32 4, %v2332_v1  ;;  %v933_v52 = vmul.f32 %v932_v23, %v2666_v48 }
 0x13d   :  { %v1363_v31 = vadd.s32 1, %v1359_v32  ;;  %vm638_vm6 = vcmp.lt.s32.totalorder %v2582_v47, 2  ;;  %v788_v4 = vadd.f32 1.0, %v787_v59  ;;  %v1081_v50 = vsub.s32 4, %v2483_v43 }
 0x13e   :  { %v927_v46 = vsel %vm804_vm3, %v2941_v2, %v2332_v1  ;;  %v1241_v7 = vmul.f32 -0.001358992, %v1240_v60  ;;  %v1248_v56 = vmul.f32 -0.00019511016, %v1240_v60  ;;  %v941_v57 = vadd.f32 -0.16666654, %v940_v27 }
 0x13f   :  { %v1088_v13 = vmul.f32 %v1087_v0, %v2718_v8  ;;  %v1236_v25 = vsub.s32 4, %v2631_v11  ;;  %v1364_v36 = vsel %vm1362_vm2, %v1363_v31, %v1359_v32  ;;  %v1096_v35 = vadd.f32 -0.16666654, %v1095_v24 }
 0x140   :  { %v1242_v33 = vadd.f32 0.041655596, %v1241_v7  ;;  %v1249_v30 = vadd.f32 0.008332121, %v1248_v56  ;;  %v1365_v1 = vadd.s32 %v1364_v36, %v1360_v12  ;;  %v2942_v16 = vxor.u32 2147483648, %v2600_v61 }
 0x141   :  { %v792_v53 = vand.u32 3, %v791_v20  ;;  %v929_v54 = vsel %vm2593_vm5, 0, %v927_v46  ;;  %v934_v15 = vadd.f32 -0.4999988, %v933_v52  ;;  %v1082_v29 = vsel %vm959_vm8, %v1081_v50, %v2483_v43 }
 0x142   :  { %v641_v44 = vsel %vm639_vm13, %v2589_v17, %v2942_v16  ;;  %v1243_v38 = vmul.f32 %v1242_v33, %v1240_v60  ;;  %v1250_v45 = vmul.f32 %v1249_v30, %v1240_v60  ;;  %v1366_v23 = vadd.s32 536870912, %v1365_v1 }
 0x143   :  { %v781_v49 = vadd.f32 1.0, %v780_v19  ;;  %v789_v58 = vmul.f32 %v788_v4, %v2574_v10  ;;  %v942_v61 = vmul.f32 %v941_v57, %v2666_v48  ;;  %v1089_v40 = vadd.f32 -0.4999988, %v1088_v13 }
 0x144   :  { %v1097_v17 = vmul.f32 %v1096_v35, %v2718_v8  ;;  %v1237_v5 = vsel %vm1114_vm0, %v1236_v25, %v2631_v11  ;;  %v1251_v59 = vadd.f32 -0.16666654, %v1250_v45  ;;  %v2804_v6 = vshrl.u32 %v1366_v23, 30 }
 0x145   :  { %vm794_vm3 = vcmp.eq.s32.totalorder %v792_v53, 0  ;;  %v946_v43 = vadd.s32 3, %v929_v54  ;;  %v1084_v20 = vsel %vm2691_vm12, 0, %v1082_v29  ;;  %v1244_v55 = vadd.f32 -0.4999988, %v1243_v38 }
 0x146   :  { %vm797_vm5 = vcmp.eq.s32.totalorder %v792_v53, 2  ;;  %v935_v10 = vmul.f32 %v934_v15, %v2666_v48  ;;  %v1252_v27 = vmul.f32 %v1251_v59, %v1240_v60  ;;  %v1368_v0 = vshll.u32 %v2804_v6, 30 }
 0x147   :  { %v795_v32 = vxor.u32 2147483648, %v789_v58  ;;  %v798_v24 = vxor.u32 2147483648, %v781_v49  ;;  %v943_v12 = vadd.f32 1.0, %v942_v61  ;;  %v1239_v11 = vsel %vm2741_vm7, 0, %v1237_v5 }
 0x148   :  { %v1090_v19 = vmul.f32 %v1089_v40, %v2718_v8  ;;  %v1098_v2 = vadd.f32 1.0, %v1097_v17  ;;  %v1101_v46 = vadd.s32 3, %v1084_v20  ;;  %v1369_v52 = vsub.s32 %v1365_v1, %v1368_v0 }
 0x149   :  { %v645_v18 = vsel %vm638_vm6, %v641_v44, %v644_v41  ;;  %v947_v31 = vand.u32 3, %v946_v43  ;;  %v1245_v4 = vmul.f32 %v1244_v55, %v1240_v60  ;;  %v1253_v48 = vadd.f32 1.0, %v1252_v27 }
 0x14a   :  { %v936_v50 = vadd.f32 1.0, %v935_v10  ;;  %v1256_v7 = vadd.s32 3, %v1239_v11  ;;  %vm1370_vm8 = vcmp.lt.s32.totalorder %v1369_v52, 0  ;;  %v1371_v56 = vsub.s32 0, %v1369_v52 }
 0x14b   :  { %vm635_vm9 = vweird.f32 %v1544_v62  ;;  %vm793_vm10 = vcmp.lt.s32.totalorder %v792_v53, 2  ;;  %v796_v39 = vsel %vm794_vm3, %v781_v49, %v795_v32  ;;  %v799_v8 = vsel %vm797_vm5, %v798_v24, %v789_v58 }
 0x14c   :  { %v944_v57 = vmul.f32 %v943_v12, %v2646_v3  ;;  %v1091_v13 = vadd.f32 1.0, %v1090_v19  ;;  %v1099_v47 = vmul.f32 %v1098_v2, %v2710_v26  ;;  %v1102_v41 = vand.u32 3, %v1101_v46 }
 0x14d   :  { %v1372_v25 = vsel %vm1370_vm8, %v1371_v56, %v1369_v52  ;;  %vm790_vm12 = vweird.f32 %v2926_v63  ;;  %v1246_v60 = vadd.f32 1.0, %v1245_v4  ;;  %v1254_v36 = vmul.f32 %v1253_v48, %v2769_v51 }
 0x14e   :  { %v1373_v35 = vclz %v1372_v25  ;;  %v800_v33 = vsel %vm793_vm10, %v796_v39, %v799_v8  ;;  %vm948_vm14 = vcmp.lt.s32.totalorder %v947_v31, 2  ;;  %v953_v30 = vxor.u32 2147483648, %v936_v50 }
 0x14f   :  { %v1257_v1 = vand.u32 3, %v1256_v7  ;;  %vm949_vm15 = vcmp.eq.s32.totalorder %v947_v31, 0  ;;  %v950_v16 = vxor.u32 2147483648, %v944_v57  ;;  %vm952_vm0 = vcmp.eq.s32.totalorder %v947_v31, 2 }
 0x150   :  { %v1458_v44 = vadd.s32 4294967294, %v1373_v35  ;;  %vm1104_vm1 = vcmp.eq.s32.totalorder %v1102_v41, 0  ;;  %v1105_v3 = vxor.u32 2147483648, %v1099_v47  ;;  %vm1107_vm4 = vcmp.eq.s32.totalorder %v1102_v41, 2 }
 0x151   :  { %v1108_v26 = vxor.u32 2147483648, %v1091_v13  ;;  %v1260_v53 = vxor.u32 2147483648, %v1254_v36  ;;  %v1263_v54 = vxor.u32 2147483648, %v1246_v60  ;;  %v1361_v15 = vadd.s32 %v2747_v37, %v2745_v28 }
 0x152   :  { %vm1459_vm11 = vcmp.lt.s32.totalorder %v1458_v44, 0  ;;  %v954_v51 = vsel %vm952_vm0, %v953_v30, %v944_v57  ;;  %vm1259_vm13 = vcmp.eq.s32.totalorder %v1257_v1, 0  ;;  %vm1262_vm7 = vcmp.eq.s32.totalorder %v1257_v1, 2 }
 0x153   :  { %v1376_v29 = vsel %vm1459_vm11, 0, %v1458_v44  ;;  %v951_v38 = vsel %vm949_vm15, %v936_v50, %v950_v16  ;;  %vm1103_vm2 = vcmp.lt.s32.totalorder %v1102_v41, 2  ;;  %v1106_v58 = vsel %vm1104_vm1, %v1091_v13, %v1105_v3 }
 0x154   :  { %v1377_v45 = vsub.s32 32, %v1376_v29  ;;  %v1378_v23 = vshll.u32 %v1369_v52, %v1376_v29  ;;  %v1381_v49 = vsub.s32 4294967266, %v1376_v29  ;;  %v1109_v61 = vsel %vm1107_vm4, %v1108_v26, %v1099_v47 }
 0x155   :  { %vm1258_vm6 = vcmp.lt.s32.totalorder %v1257_v1, 2  ;;  %v1261_v40 = vsel %vm1259_vm13, %v1246_v60, %v1260_v53  ;;  %v1264_v17 = vsel %vm1262_vm7, %v1263_v54, %v1254_v36  ;;  %v646_v37 = vsel %vm635_vm9, nan, %v645_v18 }
 0x156   :  { %v1379_v5 = vshrl.u32 %v1361_v15, %v1377_v45  ;;  %v1382_v28 = vadd.s32 127, %v1381_v49  ;;  %vm945_vm3 = vweird.f32 %v2930_v14  ;;  %v955_v59 = vsel %vm948_vm14, %v951_v38, %v954_v51 }
 0x157   :  { %vm1100_vm5 = vweird.f32 %v2189_v21  ;;  %v1110_v43 = vsel %vm1103_vm2, %v1106_v58, %v1109_v61  ;;  %vm1422_vm8 = vcmask 261120   ;;  %v801_v10 = vsel %vm790_vm12, nan, %v800_v33 }
 0x158   :  { %v1380_v20 = vor.u32 %v1379_v5, %v1378_v23  ;;  %v1383_v55 = vshll.u32 %v1382_v28, 23  ;;  %vm1255_vm10 = vweird.f32 %v2262_v22  ;;  %v1265_v27 = vsel %vm1258_vm6, %v1261_v40, %v1264_v17  ;;  %1423 = vst.msk [vmem:[%s2877_s1] sm:$0xff] %vm1422_vm8, %v2388_v9 }
 0x159   :  { %v956_v62 = vsel %vm945_vm3, nan, %v955_v59  ;;  %1424 = vst.msk [vmem:[%s2877_s1 + $0x8] sm:$0xff] %vm1422_vm8, %v2523_v34  ;;  %v1111_v21 = vsel %vm1100_vm5, nan, %v1110_v43  ;;  %v1266_v22 = vsel %vm1255_vm10, nan, %v1265_v27  ;;  %vm1269_vm9 = vcmp.lt.s32.totalorder %v2266_v42, 0 }
 0x15a   :  { %v1384_v14 = vor.u32 4788187, %v1383_v55  ;;  %v1387_v0 = vcvt.s32.f32 %v1380_v20  ;;  %1425 = vst.msk [vmem:[%s2877_s1 + $0x10] sm:$0xff] %vm1422_vm8, %v646_v37  ;;  %v1391_v34 = vsub.s32 4, %v2804_v6  ;;  %v2943_v32 = vand.u32 2147483647, %v2266_v42 }
 0x15b   :  { %1426 = vst.msk [vmem:[%s2877_s1 + $0x18] sm:$0xff] %vm1422_vm8, %v801_v10  ;;  %vm1410_vm1 = vweird.f32 %v2266_v42 }
 0x15c   :  { %v1385_v63 = vand.u32 2147483647, %v1384_v14  ;;  %1427 = vst.msk [vmem:[%s2877_s1 + $0x20] sm:$0xff] %vm1422_vm8, %v956_v62  ;;  %vm1268_vm12 = vcmp.le.f32.partialorder %v2943_v32, 0.7853982  ;;  %v1392_v11 = vsel %vm1269_vm9, %v1391_v34, %v2804_v6 }
 0x15d   :  { %1428 = vst.msk [vmem:[%s2877_s1 + $0x28] sm:$0xff] %vm1422_vm8, %v1111_v21  ;;  %v1394_v46 = vsel %vm1268_vm12, 0, %v1392_v11 }
 0x15e   :  { %v1388_v9 = vmul.f32 %v1387_v0, %v1385_v63  ;;  %1429 = vst.msk [vmem:[%s2877_s1 + $0x30] sm:$0xff] %vm1422_vm8, %v1266_v22  ;;  %v1411_v48 = vadd.s32 3, %v1394_v46 }
 0x160   :  { %v1389_v24 = vxor.u32 2147483648, %v1388_v9  ;;  %v1412_v8 = vand.u32 3, %v1411_v48 }
 0x162   :  { %v1390_v12 = vsel %vm1269_vm9, %v1389_v24, %v1388_v9  ;;  %vm1417_vm14 = vcmp.eq.s32.totalorder %v1412_v8, 2  ;;  %vm1414_vm15 = vcmp.eq.s32.totalorder %v1412_v8, 0  ;;  %vm1413_vm0 = vcmp.lt.s32.totalorder %v1412_v8, 2 }
 0x163   :  { %v1393_v19 = vsel %vm1268_vm12, %v2266_v42, %v1390_v12 }
 0x164   :  { %v1395_v2 = vmul.f32 %v1393_v19, %v1393_v19 }
 0x166   :  { %v1396_v52 = vmul.f32 -0.001358992, %v1395_v2  ;;  %v1403_v18 = vmul.f32 -0.00019511016, %v1395_v2 }
 0x168   :  { %v1397_v31 = vadd.f32 0.041655596, %v1396_v52  ;;  %v1404_v4 = vadd.f32 0.008332121, %v1403_v18 }
 0x16a   :  { %v1398_v50 = vmul.f32 %v1397_v31, %v1395_v2  ;;  %v1405_v7 = vmul.f32 %v1404_v4, %v1395_v2 }
 0x16c   :  { %v1399_v56 = vadd.f32 -0.4999988, %v1398_v50  ;;  %v1406_v39 = vadd.f32 -0.16666654, %v1405_v7 }
 0x16e   :  { %v1400_v57 = vmul.f32 %v1399_v56, %v1395_v2  ;;  %v1407_v13 = vmul.f32 %v1406_v39, %v1395_v2 }
 0x170   :  { %v1401_v47 = vadd.f32 1.0, %v1400_v57  ;;  %v1408_v41 = vadd.f32 1.0, %v1407_v13 }
 0x172   :  { %v1409_v6 = vmul.f32 %v1408_v41, %v1393_v19  ;;  %v1418_v25 = vxor.u32 2147483648, %v1401_v47 }
 0x174   :  { %v1415_v60 = vxor.u32 2147483648, %v1409_v6  ;;  %v1419_v36 = vsel %vm1417_vm14, %v1418_v25, %v1409_v6 }
 0x176   :  { %v1416_v35 = vsel %vm1414_vm15, %v1401_v47, %v1415_v60 }
 0x177   :  { %v1420_v33 = vsel %vm1413_vm0, %v1416_v35, %v1419_v36 }
 0x178   :  { %v1421_v30 = vsel %vm1410_vm1, nan, %v1420_v33 }
 0x179   :  { %1430 = vst.msk [vmem:[%s2877_s1 + $0x38] sm:$0xff] %vm1422_vm8, %v1421_v30 }
 0x17a   :  { %1435 = vsyncpa [#allocation3], 1 }

</bundles_post_ra>
